<compile_context>
chip_gen: v7x
topology: tpu7x:2x2x1
jax: 0.10.0
libtpu: 0.0.40
codegen_flags: <defaults>
</compile_context>

<pallas_src>
import jax
import jax.numpy as jnp
from jax.experimental import pallas as pl
from jax.experimental.pallas import tpu as pltpu


def abmil_kernel(x_ref, wab_ref, bab_ref, wc_ref, bc_ref, out_ref):
    block_b, n, d = x_ref.shape
    two_h = wab_ref.shape[-1]
    h = two_h // 2
    cp = wc_ref.shape[-1]

    # Collapse the packed batch into MXU rows: (block_b, N, D) -> (block_b*N, D).
    # Layout-preserving when N is a multiple of 8 (sublane tiling untouched).
    x = x_ref[...].reshape(block_b * n, d)

    # Fused gate projection: one MXU pass computes attention_a AND attention_b.
    gates = jnp.dot(x, wab_ref[...], preferred_element_type=jnp.float32) + bab_ref[...]
    a = jnp.tanh(gates[:, :h])            # EUP
    b = jax.nn.sigmoid(gates[:, h:])      # EUP
    gated = a * b                         # (block_b*N, H)  VPU

    # attention_c on the lane-padded classifier (Cp = round_up(C, 128)).
    logits = jnp.dot(gated, wc_ref[...], preferred_element_type=jnp.float32) + bc_ref[...]
    logits = logits.reshape(block_b, n, cp)

    # Softmax over the instance axis N (PyTorch dim=1), per batch element.
    m = jnp.max(logits, axis=1, keepdims=True)        # (block_b, 1, Cp)
    e = jnp.exp(logits - m)                           # (block_b, N, Cp)  EUP
    denom = jnp.sum(e, axis=1, keepdims=True)         # (block_b, 1, Cp)
    inv = pl.reciprocal(denom)                        # exact recip, then VPU mul
    out_ref[...] = (e * inv).astype(out_ref.dtype)


def _choose_block_b(batch, n, d_feat, target_rows=256, max_x_bytes=8 * 1024 * 1024):
    """Largest divisor of `batch` giving ~target_rows MXU rows within a VMEM budget."""
    best = 1
    for cand in range(1, batch + 1):
        if batch % cand:
            continue
        if cand * n * d_feat * 4 > max_x_bytes:
            break
        best = cand
        if cand * n >= target_rows:
            break
    return best


def batched_abmil(x, wa, ba, wb, bb, wc, bc, *, block_b=None):
    """x: (B, N, D) float32. Weights pre-transposed to (in, out); biases (1, out)."""
    B, N, D = x.shape
    H = wa.shape[1]
    C = wc.shape[1]

    # --- Wrapper-side operand fusion / padding (layout plumbing, done once) ---
    # Fuse the two gate projections into one (D, 2H) weight and (1, 2H) bias.
    wab = jnp.concatenate([wa, wb], axis=1)            # (D, 2H)
    bab = jnp.concatenate([ba, bb], axis=1)            # (1, 2H)

    # Pad the classifier output up to a full 128-lane width -> unmasked stores.
    LANE = 128
    Cp = ((C + LANE - 1) // LANE) * LANE
    wc_p = jnp.zeros((H, Cp), wc.dtype).at[:, :C].set(wc)
    bc_p = jnp.zeros((1, Cp), bc.dtype).at[:, :C].set(bc)

    if block_b is None:
        block_b = _choose_block_b(B, N, D)
    assert B % block_b == 0, (B, block_b)

    grid = (B // block_b,)
    full2d = lambda i: (0, 0)

    out_padded = pl.pallas_call(
        abmil_kernel,
        out_shape=jax.ShapeDtypeStruct((B, N, Cp), x.dtype),
        grid_spec=pltpu.PrefetchScalarGridSpec(
            num_scalar_prefetch=0,
            grid=grid,
            in_specs=[
                pl.BlockSpec((block_b, N, D), lambda i: (i, 0, 0)),   # x (packed batches)
                pl.BlockSpec((D, 2 * H), full2d),                     # [Wa | Wb]
                pl.BlockSpec((1, 2 * H), full2d),                     # [ba | bb]
                pl.BlockSpec((H, Cp), full2d),                        # Wc (lane padded)
                pl.BlockSpec((1, Cp), full2d),                        # bc (lane padded)
            ],
            out_specs=pl.BlockSpec((block_b, N, Cp), lambda i: (i, 0, 0)),
        ),
        compiler_params=pltpu.CompilerParams(
            dimension_semantics=("parallel",),   # shards across TCs on v7x; no-op on v5e/v6e
        ),
    )(x, wab, bab, wc_p, bc_p)

    # Drop the padded classifier lanes.
    return out_padded[:, :, :C]


def abmil_reference(x, wa, ba, wb, bb, wc, bc):
    a = jnp.tanh(jnp.einsum("bnd,dh->bnh", x, wa) + ba)
    b = jax.nn.sigmoid(jnp.einsum("bnd,dh->bnh", x, wb) + bb)
    A = jnp.einsum("bnh,hc->bnc", a * b, wc) + bc
    return jax.nn.softmax(A, axis=1)


if __name__ == "__main__":
    # Small, hardware-friendly shapes (module defaults are D=1024, H=256, C=1).
    # N multiple of 8, D/H multiples of 128 keep every slice/reshape tile-aligned.
    B, N, D, H, C = 8, 64, 128, 128, 1

    key = jax.random.PRNGKey(0)
    kx, kwa, kba, kwb, kbb, kwc, kbc = jax.random.split(key, 7)

    x = jax.random.normal(kx, (B, N, D), dtype=jnp.float32)

    # nn.Linear weights stored pre-transposed as (in, out); biases as (1, out).
    wa = jax.random.normal(kwa, (D, H), dtype=jnp.float32) * 0.1
    ba = jax.random.normal(kba, (1, H), dtype=jnp.float32) * 0.1
    wb = jax.random.normal(kwb, (D, H), dtype=jnp.float32) * 0.1
    bb = jax.random.normal(kbb, (1, H), dtype=jnp.float32) * 0.1
    wc = jax.random.normal(kwc, (H, C), dtype=jnp.float32) * 0.1
    bc = jax.random.normal(kbc, (1, C), dtype=jnp.float32) * 0.1

    out = jax.block_until_ready(batched_abmil(x, wa, ba, wb, bb, wc, bc))
    ref = jax.block_until_ready(abmil_reference(x, wa, ba, wb, bb, wc, bc))

    assert out.shape == (B, N, C), out.shape
    max_err = float(jnp.max(jnp.abs(out - ref)))
    assert jnp.allclose(out, ref, atol=1e-5, rtol=1e-5), max_err

    print("KERNEL_OK")
</pallas_src>

<mosaic_0001>
module attributes {stable_mosaic.version = 11 : i64} {
  func.func @abmil_kernel(%arg0: i32, %arg1: memref<4x64x128xf32, #tpu.memory_space<vmem>>, %arg2: memref<128x256xf32, #tpu.memory_space<vmem>>, %arg3: memref<1x256xf32, #tpu.memory_space<vmem>>, %arg4: memref<128x128xf32, #tpu.memory_space<vmem>>, %arg5: memref<1x128xf32, #tpu.memory_space<vmem>>, %arg6: memref<4x64x128xf32, #tpu.memory_space<vmem>>) attributes {dimension_semantics = [#tpu.dimension_semantics<parallel>], iteration_bounds = array<i64: 2>, scalar_prefetch = 0 : i64, scratch_operands = 0 : i64, tpu.core_type = #tpu.core_type<tc>, window_params = [{transform_indices = @transform_0, window_bounds = array<i64: 4, 64, 128>}, {pipeline_mode = #tpu.pipeline_mode<synchronous>, transform_indices = @transform_1, window_bounds = array<i64: 128, 256>}, {pipeline_mode = #tpu.pipeline_mode<synchronous>, transform_indices = @transform_2, window_bounds = array<i64: 1, 256>}, {pipeline_mode = #tpu.pipeline_mode<synchronous>, transform_indices = @transform_3, window_bounds = array<i64: 128, 128>}, {pipeline_mode = #tpu.pipeline_mode<synchronous>, transform_indices = @transform_4, window_bounds = array<i64: 1, 128>}, {transform_indices = @transform_5, window_bounds = array<i64: 4, 64, 128>}]} {
    %c0 = arith.constant 0 : index
    %c0_0 = arith.constant 0 : index
    %c0_1 = arith.constant 0 : index
    %0 = vector.load %arg1[%c0, %c0_0, %c0_1] : memref<4x64x128xf32, #tpu.memory_space<vmem>>, vector<4x64x128xf32>
    %1 = vector.shape_cast %0 : vector<4x64x128xf32> to vector<256x128xf32>
    %c0_2 = arith.constant 0 : index
    %c0_3 = arith.constant 0 : index
    %2 = vector.load %arg2[%c0_2, %c0_3] : memref<128x256xf32, #tpu.memory_space<vmem>>, vector<128x256xf32>
    %cst = arith.constant dense<0.000000e+00> : vector<256x256xf32>
    %3 = tpu.matmul %1, %2, %cst {dimension_numbers = #tpu.dot_dimension_numbers<[1], [0], [0], [1], [0, 0, 1, 1], [], []>} : vector<256x128xf32>, vector<128x256xf32>, vector<256x256xf32> -> vector<256x256xf32>
    %c0_4 = arith.constant 0 : index
    %c0_5 = arith.constant 0 : index
    %4 = vector.load %arg3[%c0_4, %c0_5] : memref<1x256xf32, #tpu.memory_space<vmem>>, vector<1x256xf32>
    %5 = vector.broadcast %4 : vector<1x256xf32> to vector<256x256xf32>
    %6 = arith.addf %3, %5 : vector<256x256xf32>
    %7 = vector.extract_strided_slice %6 {offsets = [0, 0], sizes = [256, 128], strides = [1, 1]} : vector<256x256xf32> to vector<256x128xf32>
    %8 = math.tanh %7 : vector<256x128xf32>
    %9 = vector.extract_strided_slice %6 {offsets = [0, 128], sizes = [256, 128], strides = [1, 1]} : vector<256x256xf32> to vector<256x128xf32>
    %10 = arith.negf %9 : vector<256x128xf32>
    %11 = math.exp %10 : vector<256x128xf32>
    %cst_6 = arith.constant 1.000000e+00 : f32
    %12 = vector.broadcast %cst_6 : f32 to vector<256x128xf32>
    %13 = arith.addf %12, %11 : vector<256x128xf32>
    %14 = arith.divf %12, %13 : vector<256x128xf32>
    %15 = arith.mulf %8, %14 : vector<256x128xf32>
    %c0_7 = arith.constant 0 : index
    %c0_8 = arith.constant 0 : index
    %16 = vector.load %arg4[%c0_7, %c0_8] : memref<128x128xf32, #tpu.memory_space<vmem>>, vector<128x128xf32>
    %cst_9 = arith.constant dense<0.000000e+00> : vector<256x128xf32>
    %17 = tpu.matmul %15, %16, %cst_9 {dimension_numbers = #tpu.dot_dimension_numbers<[1], [0], [0], [1], [0, 0, 1, 1], [], []>} : vector<256x128xf32>, vector<128x128xf32>, vector<256x128xf32> -> vector<256x128xf32>
    %c0_10 = arith.constant 0 : index
    %c0_11 = arith.constant 0 : index
    %18 = vector.load %arg5[%c0_10, %c0_11] : memref<1x128xf32, #tpu.memory_space<vmem>>, vector<1x128xf32>
    %19 = vector.broadcast %18 : vector<1x128xf32> to vector<256x128xf32>
    %20 = arith.addf %17, %19 : vector<256x128xf32>
    %21 = vector.shape_cast %20 : vector<256x128xf32> to vector<4x64x128xf32>
    %cst_12 = arith.constant dense<0xFF800000> : vector<4x128xf32>
    %22 = vector.multi_reduction <maximumf>, %21, %cst_12 [1] : vector<4x64x128xf32> to vector<4x128xf32>
    %23 = vector.shape_cast %22 : vector<4x128xf32> to vector<4x1x128xf32>
    %24 = vector.broadcast %23 : vector<4x1x128xf32> to vector<4x64x128xf32>
    %25 = arith.subf %21, %24 : vector<4x64x128xf32>
    %26 = math.exp %25 : vector<4x64x128xf32>
    %cst_13 = arith.constant dense<0.000000e+00> : vector<4x128xf32>
    %27 = vector.multi_reduction <add>, %26, %cst_13 [1] : vector<4x64x128xf32> to vector<4x128xf32>
    %28 = vector.shape_cast %27 : vector<4x128xf32> to vector<4x1x128xf32>
    %29 = tpu.reciprocal %28 : vector<4x1x128xf32> -> vector<4x1x128xf32>
    %30 = vector.broadcast %29 : vector<4x1x128xf32> to vector<4x64x128xf32>
    %31 = arith.mulf %26, %30 : vector<4x64x128xf32>
    %c0_14 = arith.constant 0 : index
    %c0_15 = arith.constant 0 : index
    %c0_16 = arith.constant 0 : index
    %32 = vector.load %arg6[%c0_14, %c0_15, %c0_16] : memref<4x64x128xf32, #tpu.memory_space<vmem>>, vector<4x64x128xf32>
    tpu.vector_store %arg6[%c0_14, %c0_15, %c0_16], %31 {strides = array<i32>} : memref<4x64x128xf32, #tpu.memory_space<vmem>>, vector<4x64x128xf32>,
    return
  }
  func.func @transform_0(%arg0: i32) -> (i32, i32, i32) {
    %c0_i32 = arith.constant 0 : i32
    %c0_i32_0 = arith.constant 0 : i32
    %c0_i32_1 = arith.constant 0 : i32
    return %arg0, %c0_i32, %c0_i32_0 : i32, i32, i32
  }
  func.func @transform_1(%arg0: i32) -> (i32, i32) {
    %c0_i32 = arith.constant 0 : i32
    %c0_i32_0 = arith.constant 0 : i32
    %c0_i32_1 = arith.constant 0 : i32
    return %c0_i32, %c0_i32_0 : i32, i32
  }
  func.func @transform_2(%arg0: i32) -> (i32, i32) {
    %c0_i32 = arith.constant 0 : i32
    %c0_i32_0 = arith.constant 0 : i32
    %c0_i32_1 = arith.constant 0 : i32
    return %c0_i32, %c0_i32_0 : i32, i32
  }
  func.func @transform_3(%arg0: i32) -> (i32, i32) {
    %c0_i32 = arith.constant 0 : i32
    %c0_i32_0 = arith.constant 0 : i32
    %c0_i32_1 = arith.constant 0 : i32
    return %c0_i32, %c0_i32_0 : i32, i32
  }
  func.func @transform_4(%arg0: i32) -> (i32, i32) {
    %c0_i32 = arith.constant 0 : i32
    %c0_i32_0 = arith.constant 0 : i32
    %c0_i32_1 = arith.constant 0 : i32
    return %c0_i32, %c0_i32_0 : i32, i32
  }
  func.func @transform_5(%arg0: i32) -> (i32, i32, i32) {
    %c0_i32 = arith.constant 0 : i32
    %c0_i32_0 = arith.constant 0 : i32
    %c0_i32_1 = arith.constant 0 : i32
    return %arg0, %c0_i32, %c0_i32_0 : i32, i32, i32
  }
}

</mosaic_0001>

<bundles_post_ra>
// kernel: tpu_custom_call.1
= control target key start
LH: loop header
LB: loop body
LE: loop exit
PB: predicated region body
PF: predicated region fallthrough
CT: control target
= control target key end

     0   :  { %10 = vsyncpa [#allocation3], 0  ;;  %s2973_s0 = inlined_call_operand.hbm [shape: f32[8,64,128], index: 0, kind: input, shape index: {}]   ;;  %s2974_s1 = inlined_call_operand.hbm [shape: f32[128,256], index: 1, kind: input, shape index: {}]   ;;  %s2975_s2 = inlined_call_operand.vmem [shape: f32[1,256], index: 2, kind: input, shape index: {}]   ;;  %s2976_s3 = inlined_call_operand.hbm [shape: f32[128,128], index: 3, kind: input, shape index: {}]   ;;  %s2977_s4 = inlined_call_operand.vmem [shape: f32[1,128], index: 4, kind: input, shape index: {}]   ;;  %s2978_s5 = inlined_call_operand.hbm [shape: f32[8,64,128], index: 5, kind: output, shape index: {}]  }
   0x1   :  { %12 = vsyncpa [#allocation3 + $0x1], 0 }
   0x2   :  { %13 = vsyncpa [#allocation6], 0 }
   0x3   :  { %14 = vsyncpa [#allocation4], 0 }
   0x4   :  { %16 = vsyncpa [#allocation4 + $0x1], 0  ;;  %s2289_s18 = smov 0   ;;  %s2291_s19 = smov 0  }
   0x5   :  { %s2293_s20 = smov 0   ;;  %s2295_s21 = smov 0  }
   0x6 LB: > { %s2310_s22 = sadd.s32 4294967295, %s2246_s21   ;;  %s1487_s23 = sadd.s32 4294967294, %s2246_s21   ;;  %s2246_s21 = sphi %s2295_s21, %s2998_s21   ;;  %s2242_s20 = sphi %s2293_s20, %s2997_s20   ;;  %s2238_s19 = sphi %s2291_s19, %s2996_s19   ;;  %s2234_s18 = sphi %s2289_s18, %s2995_s18  }
   0x7   : > { %p42_p0 = scmp.ne.s32.totalorder %s2238_s19, %s2234_s18  ;;  %p2979_p1 = scmp.eq.s32.totalorder %s2310_s22, 0 }
   0x8   : > { %p156_p3 = scmp.eq.s32.totalorder %s1487_s23, 1  ;;  %p1488_p5 = scmp.ge.s32.totalorder %s2246_s21, 1 }
   0x9   : > { %p2319_p4 = por %p2979_p1, %p42_p0  ;;  %p163_p7 = scmp.lt.s32.totalorder %s2246_s21, 3 }
   0xa   : > { %p2324_p6 = por %p156_p3, %p42_p0  ;;  %s2248_s27 = smov [#allocation5]  }
   0xb   : > { %s2982_s24 = scalar_select %p2319_p4, 1, 0 }
   0xc   : > { %s2983_s25 = scalar_select %p2324_p6, 1, 0 }
   0xd   : > { %p2329_p8 = pnand %p1488_p5, %p163_p7  ;;  %s175_s28 = sshll.u32 %s2248_s27, 4  ;;  %s2333_s28 = int_to_ptr.vmem [resolvable:$true] %s175_s28 }
   0xe   : > { %s2249_s30 = smov [#allocation7]   ;;  %s2090_s9 = scalar_lea.hbm %s2974_s1, 4096 }
   0xf   : > { %p1764_p9 = pneg %p2329_p8  ;;  %s191_s6 = sshll.u32 %s2249_s30, 4  ;;  %s2344_s6 = int_to_ptr.vmem [resolvable:$true] %s191_s6 }
  0x10   : > { %p2091_p12 = scmp.ne.s32.totalorder %s2974_s1, %s2090_s9  ;;  %p2097_p5 = scmp.lt.u32.totalorder %s2090_s9, %s2974_s1 }
  0x11   : > { %p2340_p11 = pnand %p1764_p9, %p2979_p1 }
  0x13   : > { %p2092_p13 = pneg %p2340_p11 }
  0x15   : > { %p2093_p0 = pnand %p2092_p13, %p2091_p12 }
  0x17   : > { %p2094_p3 = pneg %p2093_p0 }
  0x19   : > { %p2099_p7 = pnand %p2097_p5, %p2094_p3 }
  0x1b   : > { %2102 = shalt.err (!%p2099_p7)
}
  0x1c   : > { %s2103_s14 = scalar_lea.vmem %s2333_s28, 4096  ;;  %p2111_p2 = scmp.lt.s32.totalorder %s2333_s28, %s2333_s28 }
  0x1d   : > { %p2104_p9 = scmp.ne.s32.totalorder %s2333_s28, %s2103_s14  ;;  %p2112_p12 = scmp.lt.s32.totalorder %s2103_s14, %s2103_s14 }
  0x1f   : > { %p2106_p10 = pnand %p2104_p9, %p2092_p13  ;;  %p2113_p0 = por %p2112_p12, %p2111_p2 }
  0x21   : > { %p2107_p1 = pneg %p2106_p10 }
  0x23   : > { %p2114_p6 = pnand %p2113_p0, %p2107_p1 }
  0x25   : > { %2117 = shalt.err (!%p2114_p6)
}
  0x26   : > { %s2250_s15 = smov 256   ;;  %s2251_s16 = smov 16  }
  0x27   : > { %1767 = dma.hbm_to_vmem [thread:$0]  (!%p2340_p11), %s2974_s1, 4096, %s2333_s28, [#allocation6], %s2250_s15, %s2250_s15, %s2251_s16  }
  0x28   : > { %s2118_s7 = scalar_lea.hbm %s2976_s3, 2048 }
  0x29   : > { %p2119_p2 = scmp.ne.s32.totalorder %s2976_s3, %s2118_s7  ;;  %p2125_p10 = scmp.lt.u32.totalorder %s2118_s7, %s2976_s3 }
  0x2b   : > { %p2121_p1 = pnand %p2119_p2, %p2092_p13 }
  0x2d   : > { %p2122_p6 = pneg %p2121_p1 }
  0x2f   : > { %p2127_p3 = pnand %p2125_p10, %p2122_p6 }
  0x31   : > { %2130 = shalt.err (!%p2127_p3)
}
  0x32   : > { %s2131_s28 = scalar_lea.vmem %s2344_s6, 2048  ;;  %p2139_p12 = scmp.lt.s32.totalorder %s2344_s6, %s2344_s6 }
  0x33   : > { %p2132_p5 = scmp.ne.s32.totalorder %s2344_s6, %s2131_s28  ;;  %p2140_p0 = scmp.lt.s32.totalorder %s2131_s28, %s2131_s28 }
  0x35   : > { %p2134_p7 = pnand %p2132_p5, %p2092_p13  ;;  %p2141_p2 = por %p2140_p0, %p2139_p12 }
  0x37   : > { %p2135_p9 = pneg %p2134_p7 }
  0x39   : > { %p2142_p1 = pnand %p2141_p2, %p2135_p9 }
  0x3b   : > { %2145 = shalt.err (!%p2142_p1)
}
  0x3c   : > { %s2252_s12 = smov 128   ;;  %s2253_s13 = smov 8  }
  0x3d   : > { %1770 = dma.hbm_to_vmem [thread:$0]  (!%p2340_p11), %s2976_s3, 2048, %s2344_s6, [#allocation6], %s2252_s12, %s2252_s12, %s2253_s13  }
  0x3e   : > { %s2402_s16 = sadd.s32 1, %s2246_s21   ;;  %s29_s23 = sadd.s32 1, %s2242_s20 }
  0x3f   : > { %s26_s17 = ssub.s32 %s2246_s21, %s2402_s16  ;;  %p36_p6 = scmp.ne.s32.totalorder %s2242_s20, %s2238_s19 }
  0x40   : > { %p27_p13 = scmp.eq.s32.totalorder %s26_s17, 0  ;;  %p37_p10 = scmp.eq.s32.totalorder %s2246_s21, 0 }
  0x41   : > { %p2986_p5 = scmp.eq.s32.totalorder %s2310_s22, 1  ;;  %p1781_p9 = scmp.lt.s32.totalorder %s2246_s21, 2 }
  0x42   : > { %s2411_s27 = scalar_select %p27_p13, %s2242_s20, %s29_s23  }
  0x43   : > { %p38_p3 = por %p37_p10, %p36_p6  ;;  %p2415_p7 = por %p2986_p5, %p36_p6 }
  0x44   : > { %s208_s30 = sand.u32 1, %s2242_s20   ;;  %s1541_s6 = sshll.u32 %s2246_s21, 12 }
  0x45   : > { %s2987_s29 = scalar_select %p2415_p7, 1, 0 }
  0x46   : > { %s1492_s7 = sshll.u32 %s208_s30, 8  ;;  %s2425_s10 = scalar_lea.hbm %s2973_s0, %s1541_s6 }
  0x47   : > { %s212_s11 = scalar_lea.vmem [#allocation2], %s1492_s7  ;;  %p2429_p11 = pnand %p1781_p9, %p38_p3 }
  0x48   : > { %s220_s28 = sshll.u32 %s212_s11, 4  ;;  %s2433_s15 = scalar_lea.sflag [#allocation3], %s208_s30  ;;  %s2427_s28 = int_to_ptr.vmem [resolvable:$true] %s220_s28 }
  0x49   : > { %s2146_s17 = scalar_lea.hbm %s2425_s10, 4096  ;;  %p2148_p0 = pneg %p2429_p11 }
  0x4a   : > { %p2147_p12 = scmp.ne.s32.totalorder %s2425_s10, %s2146_s17  ;;  %s2151_s6 = scalar_lea.hbm %s2973_s0, 8192 }
  0x4b   : > { %p2152_p13 = scmp.lt.u32.totalorder %s2425_s10, %s2973_s0  ;;  %p2153_p6 = scmp.lt.u32.totalorder %s2151_s6, %s2146_s17 }
  0x4c   : > { %p2149_p2 = pnand %p2148_p0, %p2147_p12  ;;  %p2155_p3 = scmp.lt.u32.totalorder %s2146_s17, %s2425_s10 }
  0x4d   : > { %p2154_p10 = por %p2153_p6, %p2152_p13 }
  0x4e   : > { %p2150_p1 = pneg %p2149_p2 }
  0x4f   : > { %p2156_p5 = por %p2155_p3, %p2154_p10 }
  0x51   : > { %p2157_p9 = pnand %p2156_p5, %p2150_p1 }
  0x53   : > { %2160 = shalt.err (!%p2157_p9)
}
  0x54   : > { %s2161_s30 = scalar_lea.vmem %s2427_s28, 4096  ;;  %s2254_s11 = smov [#allocation2]  }
  0x55   : > { %p2162_p12 = scmp.ne.s32.totalorder %s2427_s28, %s2161_s30  ;;  %s2166_s23 = sshll.u32 %s2254_s11, 4  ;;  %s2167_s23 = int_to_ptr.vmem [resolvable:$false] %s2166_s23 }
  0x56   : > { %s2168_s7 = scalar_lea.vmem %s2167_s23, 8192  ;;  %p2169_p4 = scmp.lt.s32.totalorder %s2427_s28, %s2167_s23 }
  0x57   : > { %p2164_p2 = pnand %p2162_p12, %p2148_p0  ;;  %p2170_p13 = scmp.lt.s32.totalorder %s2168_s7, %s2161_s30 }
  0x59   : > { %p2165_p7 = pneg %p2164_p2  ;;  %p2171_p6 = por %p2170_p13, %p2169_p4 }
  0x5b   : > { %p2172_p10 = pnand %p2171_p6, %p2165_p7 }
  0x5d   : > { %2175 = shalt.err (!%p2172_p10)
}
  0x5e   : > { %1774 = dma.hbm_to_vmem [thread:$0]  (!%p2429_p11), %s2425_s10, 4096, %s2427_s28, %s2433_s15, %s2252_s12, %s2252_s12, %s2253_s13  }
  0x5f   : > { %232 = sbr.rel (%p2329_p8) target bundleno = 804 (0x324), region = 40  ;;  %s2467_s17 = sand.u32 (!%p2329_p8), 1, %s2238_s19  }
  0x60   : > { %s1497_s6 = sshll.u32 (!%p2329_p8), %s2467_s17, 8  ;;  %s235_s8 = scalar_lea.sflag (!%p2329_p8), [#allocation3], %s2467_s17 }
  0x61   : > { %s2473_s14 = scalar_lea.vmem (!%p2329_p8), [#allocation2], %s1497_s6  ;;  %p2989_p4 = scmp.ne.s32.totalorder (!%p2329_p8), %s2982_s24, 0 }
  0x66   : > { %2221 = dma.done.wait (%p2989_p4), %s235_s8, 4096  }
  0x67   : > { %2223 = vsyncadd (%p2989_p4), %s235_s8, 4294963200  ;;  %p2990_p7 = scmp.eq.s32.totalorder %s2310_s22, 0 }
  0x69   : > { %2225 = dma.done.wait (%p2990_p7), [#allocation6], 6144   ;;  %p2991_p8 = pmov %p2990_p7 }
  0x6a   : > { %v2255_v0 = vmov 0.0   ;;  %v308_v1 = vld [vmem:[#allocation5 + $0x8] sm:$0xff]  ;;  %v310_v2 = vld [vmem:[#allocation5 + $0x18] sm:$0xff]  ;;  %v307_v3 = vld [vmem:[#allocation5] sm:$0xff]  ;;  %s2810_s10 = scalar_lea.vmem [#allocation8], %s1497_s6  ;;  %s1543_s28 = sshll.u32 %s2310_s22, 12 }
  0x6b   : > { %2227 = vsyncadd (%p2991_p8), [#allocation6], 4294961152  ;;  %415 = vmatprep.mubr.f32.mxu0 %v2255_v0  ;;  %559 = vmatprep.mubr.f32.mxu1 %v2255_v0  ;;  %v1672_v4 = vpack.c.bf16 %v310_v2, %v308_v1  ;;  %v309_v5 = vld [vmem:[#allocation5 + $0x10] sm:$0xff]  ;;  %v312_v6 = vld [vmem:[#allocation5 + $0x28] sm:$0xff]  ;;  %s1395_s15 = sshll.u32 %s2810_s10, 4  ;;  %s2919_s11 = scalar_lea.hbm %s2978_s5, %s1543_s28  ;;  %s2921_s15 = int_to_ptr.vmem [resolvable:$true] %s1395_s15 }
  0x6c   : > { %v314_v7 = vld [vmem:[#allocation5 + $0x38] sm:$0xff]  ;;  %v1674_v8 = vpack.c.bf16 %v309_v5, %v307_v3  ;;  %v311_v10 = vld [vmem:[#allocation5 + $0x20] sm:$0xff]  ;;  %v313_v11 = vld [vmem:[#allocation5 + $0x30] sm:$0xff]  ;;  %s1381_s22 = scalar_lea.sflag [#allocation4], %s2467_s17  ;;  %s2176_s23 = scalar_lea.vmem %s2921_s15, 4096 }
  0x6d   : > { %v1676_v9 = vpack.c.bf16 %v314_v7, %v312_v6  ;;  %v316_v12 = vld [vmem:[#allocation5 + $0x48] sm:$0xff]  ;;  %1673 = vmatprep.subr.bf16.mxu0 %v1672_v4  ;;  %v318_v13 = vld [vmem:[#allocation5 + $0x58] sm:$0xff]  ;;  %1736 = vmatprep.subr.bf16.mxu1 %v1672_v4  ;;  %v1678_v14 = vpack.c.bf16 %v313_v11, %v311_v10  ;;  %v315_v16 = vld [vmem:[#allocation5 + $0x40] sm:$0xff]  ;;  %p2177_p11 = scmp.ne.s32.totalorder %s2921_s15, %s2176_s23  ;;  %p2992_p0 = scmp.ne.s32.totalorder %s2987_s29, 0 }
  0x6e   : > { %1675 = vmatpush1.bf16.msra.mxu0 %v1674_v8  ;;  %1744 = vmatpush1.bf16.msra.mxu1 %v1674_v8  ;;  %v1680_v15 = vpack.c.bf16 %v318_v13, %v316_v12  ;;  %v317_v17 = vld [vmem:[#allocation5 + $0x50] sm:$0xff]  ;;  %v320_v18 = vld [vmem:[#allocation5 + $0x68] sm:$0xff]  ;;  %v322_v19 = vld [vmem:[#allocation5 + $0x78] sm:$0xff]  ;;  %s2256_s7 = smov [#allocation8]  }
  0x6f   : > { %1677 = vmatprep.subr.bf16.mxu0 %v1676_v9  ;;  %1737 = vmatprep.subr.bf16.mxu1 %v1676_v9  ;;  %v1682_v20 = vpack.c.bf16 %v317_v17, %v315_v16  ;;  %v1684_v21 = vpack.c.bf16 %v322_v19, %v320_v18  ;;  %v319_v22 = vld [vmem:[#allocation5 + $0x60] sm:$0xff]  ;;  %v321_v23 = vld [vmem:[#allocation5 + $0x70] sm:$0xff]  ;;  %v324_v24 = vld [vmem:[#allocation5 + $0x88] sm:$0xff]  ;;  %p2178_p1 = pnand %p2177_p11, %p2992_p0  ;;  %s2180_s6 = sshll.u32 %s2256_s7, 4  ;;  %s2181_s6 = int_to_ptr.vmem [resolvable:$false] %s2180_s6 }
  0x70   : > { %v326_v25 = vld [vmem:[#allocation5 + $0x98] sm:$0xff]  ;;  %v1686_v26 = vpack.c.bf16 %v321_v23, %v319_v22  ;;  %v323_v28 = vld [vmem:[#allocation5 + $0x80] sm:$0xff]  ;;  %v325_v29 = vld [vmem:[#allocation5 + $0x90] sm:$0xff]  ;;  %s2182_s8 = scalar_lea.vmem %s2181_s6, 8192  ;;  %p2183_p5 = scmp.lt.s32.totalorder %s2921_s15, %s2181_s6 }
  0x71   : > { %v1688_v27 = vpack.c.bf16 %v326_v25, %v324_v24  ;;  %v328_v30 = vld [vmem:[#allocation5 + $0xa8] sm:$0xff]  ;;  %v330_v31 = vld [vmem:[#allocation5 + $0xb8] sm:$0xff]  ;;  %v1690_v32 = vpack.c.bf16 %v325_v29, %v323_v28  ;;  %v327_v34 = vld [vmem:[#allocation5 + $0xa0] sm:$0xff]  ;;  %p2179_p3 = pneg %p2178_p1  ;;  %p2184_p9 = scmp.lt.s32.totalorder %s2182_s8, %s2176_s23 }
  0x72   : > { %1679 = vmatpush1.bf16.msra.mxu0 %v1678_v14  ;;  %1745 = vmatpush1.bf16.msra.mxu1 %v1678_v14  ;;  %v1692_v33 = vpack.c.bf16 %v330_v31, %v328_v30  ;;  %v329_v35 = vld [vmem:[#allocation5 + $0xb0] sm:$0xff]  ;;  %v332_v36 = vld [vmem:[#allocation5 + $0xc8] sm:$0xff]  ;;  %v334_v37 = vld [vmem:[#allocation5 + $0xd8] sm:$0xff] }
  0x73   : > { %1681 = vmatprep.subr.bf16.mxu0 %v1680_v15  ;;  %1738 = vmatprep.subr.bf16.mxu1 %v1680_v15  ;;  %v1694_v38 = vpack.c.bf16 %v329_v35, %v327_v34  ;;  %v1696_v39 = vpack.c.bf16 %v334_v37, %v332_v36  ;;  %v331_v40 = vld [vmem:[#allocation5 + $0xc0] sm:$0xff]  ;;  %v333_v41 = vld [vmem:[#allocation5 + $0xd0] sm:$0xff]  ;;  %v336_v42 = vld [vmem:[#allocation5 + $0xe8] sm:$0xff]  ;;  %p2185_p12 = por %p2184_p9, %p2183_p5 }
  0x74   : > { %v338_v43 = vld [vmem:[#allocation5 + $0xf8] sm:$0xff]  ;;  %v1698_v44 = vpack.c.bf16 %v333_v41, %v331_v40  ;;  %v335_v46 = vld [vmem:[#allocation5 + $0xe0] sm:$0xff]  ;;  %v337_v47 = vld [vmem:[#allocation5 + $0xf0] sm:$0xff]  ;;  %v341_v41 = vlaneseq }
  0x75   : > { %v1700_v45 = vpack.c.bf16 %v338_v43, %v336_v42  ;;  %v1702_v48 = vpack.c.bf16 %v337_v47, %v335_v46  ;;  %v275_v49 = vld [vmem:[%s2473_s14] sm:$0xff]  ;;  %v276_v51 = vld [vmem:[%s2473_s14 + $0x8] sm:$0xff]  ;;  %v277_v53 = vld [vmem:[%s2473_s14 + $0x10] sm:$0xff]  ;;  %p2186_p2 = pnand %p2185_p12, %p2179_p3 }
  0x76   : > { %1683 = vmatpush1.bf16.msra.mxu0 %v1682_v20  ;;  %1746 = vmatpush1.bf16.msra.mxu1 %v1682_v20  ;;  %v299_v50 = vld [vmem:[%s2473_s14 + $0xc0] sm:$0xff]  ;;  %v300_v52 = vld [vmem:[%s2473_s14 + $0xc8] sm:$0xff]  ;;  %v301_v54 = vld [vmem:[%s2473_s14 + $0xd0] sm:$0xff]  ;;  %v342_v42 = vshrl.u32 %v341_v41, 7 }
  0x77   : > { %1685 = vmatprep.subr.bf16.mxu0 %v1684_v21  ;;  %1739 = vmatprep.subr.bf16.mxu1 %v1684_v21  ;;  %v278_v55 = vld [vmem:[%s2473_s14 + $0x18] sm:$0xff]  ;;  %v279_v57 = vld [vmem:[%s2473_s14 + $0x20] sm:$0xff]  ;;  %v280_v59 = vld [vmem:[%s2473_s14 + $0x28] sm:$0xff] }
  0x78   : > { %v302_v56 = vld [vmem:[%s2473_s14 + $0xd8] sm:$0xff]  ;;  %v303_v58 = vld [vmem:[%s2473_s14 + $0xe0] sm:$0xff]  ;;  %v304_v60 = vld [vmem:[%s2473_s14 + $0xe8] sm:$0xff]  ;;  %v347_v43 = vsub.s32 1, %v342_v42  ;;  %v343_v46 = vsub.s32 0, %v342_v42 }
  0x79   : > { %v281_v61 = vld [vmem:[%s2473_s14 + $0x30] sm:$0xff]  ;;  %v282_v63 = vld [vmem:[%s2473_s14 + $0x38] sm:$0xff]  ;;  %v283_v2 = vld [vmem:[%s2473_s14 + $0x40] sm:$0xff] }
  0x7a   : > { %1687 = vmatpush1.bf16.msra.mxu0 %v1686_v26  ;;  %1747 = vmatpush1.bf16.msra.mxu1 %v1686_v26  ;;  %v305_v62 = vld [vmem:[%s2473_s14 + $0xf0] sm:$0xff]  ;;  %v306_v1 = vld [vmem:[%s2473_s14 + $0xf8] sm:$0xff]  ;;  %v284_v3 = vld [vmem:[%s2473_s14 + $0x48] sm:$0xff] }
  0x7b   : > { %1689 = vmatprep.subr.bf16.mxu0 %v1688_v27  ;;  %1740 = vmatprep.subr.bf16.mxu1 %v1688_v27  ;;  %v285_v4 = vld [vmem:[%s2473_s14 + $0x50] sm:$0xff]  ;;  %v286_v5 = vld [vmem:[%s2473_s14 + $0x58] sm:$0xff]  ;;  %v287_v6 = vld [vmem:[%s2473_s14 + $0x60] sm:$0xff] }
  0x7c   : > { %v288_v7 = vld [vmem:[%s2473_s14 + $0x68] sm:$0xff]  ;;  %v289_v8 = vld [vmem:[%s2473_s14 + $0x70] sm:$0xff]  ;;  %v290_v9 = vld [vmem:[%s2473_s14 + $0x78] sm:$0xff] }
  0x7d   : > { %v291_v10 = vld [vmem:[%s2473_s14 + $0x80] sm:$0xff]  ;;  %v292_v11 = vld [vmem:[%s2473_s14 + $0x88] sm:$0xff]  ;;  %v293_v12 = vld [vmem:[%s2473_s14 + $0x90] sm:$0xff] }
  0x7e   : > { %1691 = vmatpush1.bf16.msra.mxu0 %v1690_v32  ;;  %1748 = vmatpush1.bf16.msra.mxu1 %v1690_v32  ;;  %v294_v13 = vld [vmem:[%s2473_s14 + $0x98] sm:$0xff]  ;;  %v295_v14 = vld [vmem:[%s2473_s14 + $0xa0] sm:$0xff]  ;;  %v296_v15 = vld [vmem:[%s2473_s14 + $0xa8] sm:$0xff] }
  0x7f   : > { %1693 = vmatprep.subr.bf16.mxu0 %v1692_v33  ;;  %1741 = vmatprep.subr.bf16.mxu1 %v1692_v33  ;;  %v864_v16 = vld [vmem:[#allocation7] sm:$0xff]  ;;  %v865_v17 = vld [vmem:[#allocation7 + $0x8] sm:$0xff]  ;;  %v297_v18 = vld [vmem:[%s2473_s14 + $0xb0] sm:$0xff] }
  0x80   : > { %v1704_v19 = vpack.c.bf16 %v865_v17, %v864_v16  ;;  %v866_v20 = vld [vmem:[#allocation7 + $0x10] sm:$0xff]  ;;  %v867_v21 = vld [vmem:[#allocation7 + $0x18] sm:$0xff]  ;;  %v868_v24 = vld [vmem:[#allocation7 + $0x20] sm:$0xff] }
  0x81   : > { %v298_v22 = vld [vmem:[%s2473_s14 + $0xb8] sm:$0xff]  ;;  %v1708_v23 = vpack.c.bf16 %v867_v21, %v866_v20  ;;  %v869_v25 = vld [vmem:[#allocation7 + $0x28] sm:$0xff]  ;;  %v870_v27 = vld [vmem:[#allocation7 + $0x30] sm:$0xff] }
  0x82   : > { %1695 = vmatpush1.bf16.msra.mxu0 %v1694_v38  ;;  %1749 = vmatpush1.bf16.msra.mxu1 %v1694_v38  ;;  %v1712_v26 = vpack.c.bf16 %v869_v25, %v868_v24  ;;  %v871_v28 = vld [vmem:[#allocation7 + $0x38] sm:$0xff]  ;;  %v872_v30 = vld [vmem:[#allocation7 + $0x40] sm:$0xff]  ;;  %v873_v31 = vld [vmem:[#allocation7 + $0x48] sm:$0xff] }
  0x83   : > { %1697 = vmatprep.subr.bf16.mxu0 %v1696_v39  ;;  %1742 = vmatprep.subr.bf16.mxu1 %v1696_v39  ;;  %v1716_v29 = vpack.c.bf16 %v871_v28, %v870_v27  ;;  %v1720_v32 = vpack.c.bf16 %v873_v31, %v872_v30  ;;  %v875_v33 = vld [vmem:[#allocation7 + $0x58] sm:$0xff]  ;;  %v876_v35 = vld [vmem:[#allocation7 + $0x60] sm:$0xff]  ;;  %v877_v36 = vld [vmem:[#allocation7 + $0x68] sm:$0xff] }
  0x84   : > { %v1728_v37 = vpack.c.bf16 %v877_v36, %v876_v35  ;;  %v878_v38 = vld [vmem:[#allocation7 + $0x70] sm:$0xff]  ;;  %v879_v39 = vld [vmem:[#allocation7 + $0x78] sm:$0xff] }
  0x85   : > { %v1732_v40 = vpack.c.bf16 %v879_v39, %v878_v38 }
  0x86   : > { %1699 = vmatpush1.bf16.msra.mxu0 %v1698_v44  ;;  %1750 = vmatpush1.bf16.msra.mxu1 %v1698_v44  ;;  %v339_v44 = vld [vmem:[%s2975_s2] sm:$0x3] }
  0x87   : > { %1701 = vmatprep.subr.bf16.mxu0 %v1700_v45  ;;  %1743 = vmatprep.subr.bf16.mxu1 %v1700_v45  ;;  %v2550_v45 = vrot.slane %v339_v44, %v347_v43 }
  0x8a   : > { %1703 = vmatpush1.bf16.msra.mxu0 %v1702_v48  ;;  %1751 = vmatpush1.bf16.msra.mxu1 %v1702_v48 }
  0x8b   : > { %1705 = vmatprep.subr.bf16.mxu1 %v1704_v19 }
  0x8d   : > { %416 = vmatmul.mubr.f32.vlgmr.msra.gmra.mrb[0].mxu0 %v275_v49  ;;  %560 = vmatmul.mubr.f32.vlgmr.msra.gmra.mrb[0].mxu1 %v299_v50 }
  0x8e   : > { %421 = vmatprep.mubr.f32.mxu0 %v2255_v0  ;;  %565 = vmatprep.mubr.f32.mxu1 %v2255_v0 }
  0x8f   : > { %1707 = vmatpush3.bf16.msra.mxu1 %v1704_v19 }
  0x90   : > { %1709 = vmatprep.subr.bf16.mxu1 %v1708_v23 }
  0x91   : > { %422 = vmatmul.mubr.f32.gmra.mrb[2].mxu0 %v276_v51  ;;  %566 = vmatmul.mubr.f32.gmra.mrb[2].mxu1 %v300_v52 }
  0x92   : > { %427 = vmatprep.mubr.f32.mxu0 %v2255_v0  ;;  %571 = vmatprep.mubr.f32.mxu1 %v2255_v0 }
  0x93   : > { %1711 = vmatpush3.bf16.msra.mxu1 %v1708_v23 }
  0x94   : > { %1713 = vmatprep.subr.bf16.mxu1 %v1712_v26 }
  0x95   : > { %428 = vmatmul.mubr.f32.gmra.mrb[4].mxu0 %v277_v53  ;;  %572 = vmatmul.mubr.f32.gmra.mrb[4].mxu1 %v301_v54  ;;  %v2554_v53 = vrot.slane %v339_v44, %v343_v46 }
  0x96   : > { %433 = vmatprep.mubr.f32.mxu0 %v2255_v0  ;;  %577 = vmatprep.mubr.f32.mxu1 %v2255_v0 }
  0x97   : > { %1715 = vmatpush3.bf16.msra.mxu1 %v1712_v26 }
  0x98   : > { %1717 = vmatprep.subr.bf16.mxu1 %v1716_v29 }
  0x99   : > { %434 = vmatmul.mubr.f32.gmra.mrb[6].mxu0 %v278_v55  ;;  %578 = vmatmul.mubr.f32.gmra.mrb[6].mxu1 %v302_v56 }
  0x9a   : > { %439 = vmatprep.mubr.f32.mxu0 %v2255_v0  ;;  %583 = vmatprep.mubr.f32.mxu1 %v2255_v0 }
  0x9b   : > { %1719 = vmatpush3.bf16.msra.mxu1 %v1716_v29 }
  0x9c   : > { %1721 = vmatprep.subr.bf16.mxu1 %v1720_v32 }
  0x9d   : > { %440 = vmatmul.mubr.f32.gmra.mrb[8].mxu0 %v279_v57  ;;  %584 = vmatmul.mubr.f32.gmra.mrb[8].mxu1 %v303_v58 }
  0x9e   : > { %445 = vmatprep.mubr.f32.mxu0 %v2255_v0  ;;  %589 = vmatprep.mubr.f32.mxu1 %v2255_v0 }
  0x9f   : > { %1723 = vmatpush3.bf16.msra.mxu1 %v1720_v32 }
  0xa1   : > { %446 = vmatmul.mubr.f32.gmra.mrb[10].mxu0 %v280_v59  ;;  %590 = vmatmul.mubr.f32.gmra.mrb[10].mxu1 %v304_v60 }
  0xa2   : > { %451 = vmatprep.mubr.f32.mxu0 %v2255_v0  ;;  %595 = vmatprep.mubr.f32.mxu1 %v2255_v0 }
  0xa5   : > { %452 = vmatmul.mubr.f32.gmra.mrb[12].mxu0 %v281_v61  ;;  %596 = vmatmul.mubr.f32.gmra.mrb[12].mxu1 %v305_v62 }
  0xa6   : > { %457 = vmatprep.mubr.f32.mxu0 %v2255_v0  ;;  %601 = vmatprep.mubr.f32.mxu1 %v2255_v0 }
  0xa9   : > { %458 = vmatmul.mubr.f32.gmra.mrb[14].mxu0 %v282_v63  ;;  %602 = vmatmul.mubr.f32.gmra.mrb[14].mxu1 %v306_v1 }
  0xaa   : > { %463 = vmatprep.mubr.f32.mxu0 %v2255_v0 }
  0xad   : > { %464 = vmatmul.mubr.f32.gmra.mrb[16].mxu0 %v283_v2 }
  0xae   : > { %469 = vmatprep.mubr.f32.mxu0 %v2255_v0 }
  0xb1   : > { %470 = vmatmul.mubr.f32.gmra.mrb[18].mxu0 %v284_v3 }
  0xb2   : > { %475 = vmatprep.mubr.f32.mxu0 %v2255_v0 }
  0xb5   : > { %476 = vmatmul.mubr.f32.gmra.mrb[20].mxu0 %v285_v4 }
  0xb6   : > { %481 = vmatprep.mubr.f32.mxu0 %v2255_v0 }
  0xb9   : > { %482 = vmatmul.mubr.f32.gmra.mrb[22].mxu0 %v286_v5 }
  0xba   : > { %487 = vmatprep.mubr.f32.mxu0 %v2255_v0 }
  0xbd   : > { %488 = vmatmul.mubr.f32.gmra.mrb[24].mxu0 %v287_v6 }
  0xbe   : > { %493 = vmatprep.mubr.f32.mxu0 %v2255_v0 }
  0xc1   : > { %494 = vmatmul.mubr.f32.gmra.mrb[26].mxu0 %v288_v7 }
  0xc2   : > { %499 = vmatprep.mubr.f32.mxu0 %v2255_v0 }
  0xc5   : > { %500 = vmatmul.mubr.f32.gmra.mrb[28].mxu0 %v289_v8 }
  0xc6   : > { %505 = vmatprep.mubr.f32.mxu0 %v2255_v0 }
  0xc9   : > { %506 = vmatmul.mubr.f32.gmra.mrb[30].mxu0 %v290_v9 }
  0xca   : > { %511 = vmatprep.mubr.f32.mxu0 %v2255_v0 }
  0xcd   : > { %512 = vmatmul.mubr.f32.gmra.mrb[32].mxu0 %v291_v10 }
  0xce   : > { %517 = vmatprep.mubr.f32.mxu0 %v2255_v0 }
  0xd1   : > { %518 = vmatmul.mubr.f32.gmra.mrb[34].mxu0 %v292_v11 }
  0xd2   : > { %523 = vmatprep.mubr.f32.mxu0 %v2255_v0 }
  0xd5   : > { %524 = vmatmul.mubr.f32.gmra.mrb[36].mxu0 %v293_v12 }
  0xd6   : > { %529 = vmatprep.mubr.f32.mxu0 %v2255_v0 }
  0xd9   : > { %530 = vmatmul.mubr.f32.gmra.mrb[38].mxu0 %v294_v13 }
  0xda   : > { %535 = vmatprep.mubr.f32.mxu0 %v2255_v0 }
  0xdd   : > { %536 = vmatmul.mubr.f32.gmra.mrb[40].mxu0 %v295_v14 }
  0xde   : > { %541 = vmatprep.mubr.f32.mxu0 %v2255_v0 }
  0xe1   : > { %542 = vmatmul.mubr.f32.gmra.mrb[42].mxu0 %v296_v15 }
  0xe2   : > { %547 = vmatprep.mubr.f32.mxu0 %v2255_v0 }
  0xe5   : > { %548 = vmatmul.mubr.f32.gmra.mrb[44].mxu0 %v297_v18 }
  0xe6   : > { %553 = vmatprep.mubr.f32.mxu0 %v2255_v0  ;;  %v874_v0 = vld [vmem:[#allocation7 + $0x50] sm:$0xff] }
  0xe7   : > { %v1724_v34 = vpack.c.bf16 %v875_v33, %v874_v0 }
  0xe9   : > { %554 = vmatmul.mubr.f32.gmra.mrb[46].mxu0 %v298_v22  ;;  %1725 = vmatprep.subr.bf16.mxu1 %v1724_v34 }
  0xea   : > { %1727 = vmatpush3.bf16.msra.mxu1 %v1724_v34 }
  0xeb   : > { %1729 = vmatprep.subr.bf16.mxu1 %v1728_v37 }
  0xee   : > { %1731 = vmatpush3.bf16.msra.mxu1 %v1728_v37 }
  0xef   : > { %1733 = vmatprep.subr.bf16.mxu1 %v1732_v40 }
  0xf2   : > { %1735 = vmatpush3.bf16.msra.mxu1 %v1732_v40 }
 0x160   : > { %v417_v47 = vpop.f32.mrb[0].mxu0  ;;  %v561_v48 = vpop.f32.mrb[0].mxu1 }
 0x161   : > { %v419_v49 = vpop.f32.mrb[1].mxu0  ;;  %v563_v50 = vpop.f32.mrb[1].mxu1  ;;  %v418_v62 = vadd.f32 %v417_v47, %v2554_v53  ;;  %v562_v5 = vadd.f32 %v561_v48, %v2554_v53 }
 0x162   : > { %v420_v51 = vadd.f32 %v419_v49, %v2550_v45  ;;  %v564_v52 = vadd.f32 %v563_v50, %v2550_v45 }
 0x164   : > { %v1501_v54 = vmul.f32 -1.442695, %v420_v51  ;;  %v423_v55 = vpop.f32.mrb[2].mxu0  ;;  %v1525_v56 = vmul.f32 -1.442695, %v564_v52  ;;  %v567_v57 = vpop.f32.mrb[2].mxu1 }
 0x165   : > { %v425_v58 = vpop.f32.mrb[3].mxu0  ;;  %v569_v59 = vpop.f32.mrb[3].mxu1  ;;  %v424_v9 = vadd.f32 %v423_v55, %v2554_v53  ;;  %v568_v15 = vadd.f32 %v567_v57, %v2554_v53 }
 0x166   : > { %1826 = vpow2.f32 %v1501_v54  ;;  %v426_v60 = vadd.f32 %v425_v58, %v2550_v45  ;;  %v570_v61 = vadd.f32 %v569_v59, %v2550_v45 }
 0x167   : > { %1828 = vpow2.f32 %v1525_v56 }
 0x168   : > { %v1502_v63 = vmul.f32 -1.442695, %v426_v60  ;;  %v429_v1 = vpop.f32.mrb[4].mxu0  ;;  %v1526_v2 = vmul.f32 -1.442695, %v570_v61  ;;  %v573_v3 = vpop.f32.mrb[4].mxu1 }
 0x169   : > { %v431_v4 = vpop.f32.mrb[5].mxu0  ;;  %v575_v6 = vpop.f32.mrb[5].mxu1  ;;  %v430_v19 = vadd.f32 %v429_v1, %v2554_v53  ;;  %v574_v32 = vadd.f32 %v573_v3, %v2554_v53 }
 0x16a   : > { %1830 = vpow2.f32 %v1502_v63  ;;  %v432_v7 = vadd.f32 %v431_v4, %v2550_v45  ;;  %v576_v8 = vadd.f32 %v575_v6, %v2550_v45 }
 0x16b   : > { %1832 = vtanh.f32 %v418_v62 }
 0x16c   : > { %v1503_v10 = vmul.f32 -1.442695, %v432_v7  ;;  %v435_v11 = vpop.f32.mrb[6].mxu0  ;;  %1834 = vpow2.f32 %v1526_v2  ;;  %v1527_v12 = vmul.f32 -1.442695, %v576_v8  ;;  %v2563_v13 = vpop.f32.mrb[6].mxu1 }
 0x16d   : > { %v437_v14 = vpop.f32.mrb[7].mxu0  ;;  %1836 = vtanh.f32 %v562_v5  ;;  %v581_v16 = vpop.f32.mrb[7].mxu1  ;;  %v436_v42 = vadd.f32 %v435_v11, %v2554_v53  ;;  %v580_v11 = vadd.f32 %v2563_v13, %v2554_v53 }
 0x16e   : > { %1838 = vpow2.f32 %v1503_v10  ;;  %v438_v17 = vadd.f32 %v437_v14, %v2550_v45  ;;  %v582_v50 = vadd.f32 %v581_v16, %v2550_v45 }
 0x16f   : > { %1840 = vtanh.f32 %v424_v9 }
 0x170   : > { %v1827_v18 = vpop.eup %1826  ;;  %v1504_v20 = vmul.f32 -1.442695, %v438_v17  ;;  %v441_v21 = vpop.f32.mrb[8].mxu0  ;;  %1842 = vpow2.f32 %v1527_v12  ;;  %v1528_v2 = vmul.f32 -1.442695, %v582_v50 }
 0x171   : > { %v2568_v22 = vpop.f32.mrb[8].mxu1  ;;  %v736_v23 = vadd.f32 1.0, %v1827_v18  ;;  %v443_v24 = vpop.f32.mrb[9].mxu0  ;;  %1844 = vtanh.f32 %v568_v15  ;;  %v442_v58 = vadd.f32 %v441_v21, %v2554_v53 }
 0x172   : > { %v2570_v25 = vpop.f32.mrb[9].mxu1  ;;  %v1829_v26 = vpop.eup %1828  ;;  %1846 = vpow2.f32 %v1504_v20  ;;  %v444_v27 = vadd.f32 %v443_v24, %v2550_v45 }
 0x173   : > { %1848 = vrcp.f32 %v736_v23  ;;  %v760_v28 = vadd.f32 1.0, %v1829_v26  ;;  %v588_v18 = vadd.f32 %v2570_v25, %v2550_v45 }
 0x174   : > { %v1831_v29 = vpop.eup %1830  ;;  %1850 = vtanh.f32 %v430_v19  ;;  %v1505_v30 = vmul.f32 -1.442695, %v444_v27  ;;  %v447_v31 = vpop.f32.mrb[10].mxu0 }
 0x175   : > { %v2574_v0 = vpop.f32.mrb[10].mxu1  ;;  %v1833_v33 = vpop.eup %1832  ;;  %v737_v34 = vadd.f32 1.0, %v1831_v29  ;;  %1852 = vrcp.f32 %v760_v28  ;;  %v448_v16 = vadd.f32 %v447_v31, %v2554_v53  ;;  %v1529_v31 = vmul.f32 -1.442695, %v588_v18 }
 0x176   : > { %v449_v35 = vpop.f32.mrb[11].mxu0  ;;  %v2576_v36 = vpop.f32.mrb[11].mxu1  ;;  %1854 = vpow2.f32 %v1505_v30 }
 0x177   : > { %v1835_v37 = vpop.eup %1834  ;;  %v450_v38 = vadd.f32 %v449_v35, %v2550_v45  ;;  %1856 = vrcp.f32 %v737_v34 }
 0x178   : > { %v1837_v39 = vpop.eup %1836  ;;  %v761_v40 = vadd.f32 1.0, %v1835_v37  ;;  %v453_v44 = vpop.f32.mrb[12].mxu0  ;;  %1858 = vtanh.f32 %v574_v32 }
 0x179   : > { %v1839_v41 = vpop.eup %1838  ;;  %v1506_v43 = vmul.f32 -1.442695, %v450_v38  ;;  %v2580_v46 = vpop.f32.mrb[12].mxu1  ;;  %v454_v13 = vadd.f32 %v453_v44, %v2554_v53 }
 0x17a   : > { %v1841_v47 = vpop.eup %1840  ;;  %v738_v48 = vadd.f32 1.0, %v1839_v41  ;;  %v455_v49 = vpop.f32.mrb[13].mxu0  ;;  %1860 = vrcp.f32 %v761_v40 }
 0x17b   : > { %v2583_v51 = vpop.f32.mrb[13].mxu1  ;;  %v1843_v52 = vpop.eup %1842  ;;  %1862 = vpow2.f32 %v1506_v43  ;;  %v456_v54 = vadd.f32 %v455_v49, %v2550_v45 }
 0x17c   : > { %v1845_v55 = vpop.eup %1844  ;;  %1864 = vrcp.f32 %v738_v48  ;;  %v762_v56 = vadd.f32 1.0, %v1843_v52  ;;  %v459_v60 = vpop.f32.mrb[14].mxu0 }
 0x17d   : > { %v1847_v57 = vpop.eup %1846  ;;  %1866 = vtanh.f32 %v436_v42  ;;  %v1507_v59 = vmul.f32 -1.442695, %v456_v54  ;;  %v2587_v61 = vpop.f32.mrb[14].mxu1  ;;  %v460_v38 = vadd.f32 %v459_v60, %v2554_v53 }
 0x17e   : > { %v1849_v62 = vpop.eup %1848  ;;  %v739_v63 = vadd.f32 1.0, %v1847_v57  ;;  %v461_v1 = vpop.f32.mrb[15].mxu0  ;;  %1868 = vrcp.f32 %v762_v56  ;;  %v586_v57 = vadd.f32 %v2568_v22, %v2554_v53 }
 0x17f   : > { %v2589_v3 = vpop.f32.mrb[15].mxu1  ;;  %v1851_v4 = vpop.eup %1850  ;;  %1870 = vpow2.f32 %v1507_v59  ;;  %v462_v5 = vadd.f32 %v461_v1, %v2550_v45  ;;  %v832_v6 = vmul.f32 %v1849_v62, %v1833_v33 }
 0x180   : > { %v1853_v7 = vpop.eup %1852  ;;  %1872 = vrcp.f32 %v739_v63  ;;  %v465_v10 = vpop.f32.mrb[16].mxu0  ;;  %v594_v63 = vadd.f32 %v2576_v36, %v2550_v45 }
 0x181   : > { %v1855_v8 = vpop.eup %1854  ;;  %1874 = vtanh.f32 %v442_v58  ;;  %v1508_v9 = vmul.f32 -1.442695, %v462_v5  ;;  %1624 = vmatprep.mubr.f32.mxu1 %v832_v6  ;;  %v2594_v12 = vmul.f32 %v1853_v7, %v1837_v39  ;;  %v467_v17 = vpop.f32.mrb[17].mxu0  ;;  %v466_v44 = vadd.f32 %v465_v10, %v2554_v53 }
 0x182   : > { %v1857_v14 = vpop.eup %1856  ;;  %v740_v15 = vadd.f32 1.0, %v1855_v8  ;;  %1876 = vpow2.f32 %v1528_v2  ;;  %v468_v20 = vadd.f32 %v467_v17, %v2550_v45  ;;  %v1530_v36 = vmul.f32 -1.442695, %v594_v63 }
 0x183   : > { %v1859_v19 = vpop.eup %1858  ;;  %1878 = vpow2.f32 %v1508_v9  ;;  %v833_v21 = vmul.f32 %v1857_v14, %v1841_v47 }
 0x184   : > { %v1861_v23 = vpop.eup %1860  ;;  %1880 = vrcp.f32 %v740_v15  ;;  %v1509_v26 = vmul.f32 -1.442695, %v468_v20  ;;  %v471_v27 = vpop.f32.mrb[18].mxu0 }
 0x185   : > { %v1863_v24 = vpop.eup %1862  ;;  %1625 = vmatmul.mubr.f32.vlgmr.msra.gmra.mrb[16].mxu1 %v833_v21  ;;  %1882 = vtanh.f32 %v580_v11  ;;  %v2601_v28 = vmul.f32 %v1861_v23, %v1845_v55  ;;  %v473_v25 = vpop.f32.mrb[19].mxu0  ;;  %v472_v7 = vadd.f32 %v471_v27, %v2554_v53 }
 0x186   : > { %v1865_v29 = vpop.eup %1864  ;;  %1884 = vtanh.f32 %v448_v16  ;;  %v741_v30 = vadd.f32 1.0, %v1863_v24  ;;  %v474_v33 = vadd.f32 %v473_v25, %v2550_v45 }
 0x187   : > { %v1867_v32 = vpop.eup %1866  ;;  %1886 = vpow2.f32 %v1509_v26  ;;  %v834_v34 = vmul.f32 %v1865_v29, %v1851_v4 }
 0x188   : > { %v1869_v35 = vpop.eup %1868  ;;  %1888 = vrcp.f32 %v741_v30  ;;  %v1510_v39 = vmul.f32 -1.442695, %v474_v33  ;;  %v477_v40 = vpop.f32.mrb[20].mxu0 }
 0x189   : > { %v1871_v37 = vpop.eup %1870  ;;  %1890 = vtanh.f32 %v454_v13  ;;  %1627 = vmatprep.mubr.f32.mxu1 %v834_v34  ;;  %v2605_v41 = vmul.f32 %v1869_v35, %v1859_v19  ;;  %v479_v47 = vpop.f32.mrb[21].mxu0  ;;  %v478_v19 = vadd.f32 %v477_v40, %v2554_v53  ;;  %v592_v34 = vadd.f32 %v2574_v0, %v2554_v53 }
 0x18a   : > { %v1873_v42 = vpop.eup %1872  ;;  %v742_v43 = vadd.f32 1.0, %v1871_v37  ;;  %1892 = vpow2.f32 %v1529_v31  ;;  %v480_v49 = vadd.f32 %v479_v47, %v2550_v45  ;;  %v600_v40 = vadd.f32 %v2583_v51, %v2550_v45 }
 0x18b   : > { %v1875_v48 = vpop.eup %1874  ;;  %1894 = vpow2.f32 %v1510_v39  ;;  %v835_v50 = vmul.f32 %v1873_v42, %v1867_v32 }
 0x18c   : > { %v1877_v52 = vpop.eup %1876  ;;  %1896 = vrcp.f32 %v742_v43  ;;  %v1511_v55 = vmul.f32 -1.442695, %v480_v49  ;;  %v483_v56 = vpop.f32.mrb[22].mxu0 }
 0x18d   : > { %v1879_v54 = vpop.eup %1878  ;;  %1898 = vtanh.f32 %v460_v38  ;;  %1628 = vmatmul.mubr.f32.gmra.mrb[18].mxu1 %v835_v50  ;;  %v485_v60 = vpop.f32.mrb[23].mxu0  ;;  %v763_v62 = vadd.f32 1.0, %v1877_v52  ;;  %v484_v38 = vadd.f32 %v483_v56, %v2554_v53  ;;  %v1531_v56 = vmul.f32 -1.442695, %v600_v40 }
 0x18e   : > { %v1881_v58 = vpop.eup %1880  ;;  %v743_v59 = vadd.f32 1.0, %v1879_v54  ;;  %1900 = vtanh.f32 %v466_v44  ;;  %v486_v2 = vadd.f32 %v485_v60, %v2550_v45 }
 0x18f   : > { %v2613_v1 = vpop.eup %1882  ;;  %1902 = vpow2.f32 %v1511_v55  ;;  %v836_v4 = vmul.f32 %v1881_v58, %v1875_v48 }
 0x190   : > { %v1885_v5 = vpop.eup %1884  ;;  %1904 = vrcp.f32 %v743_v59  ;;  %v1512_v22 = vmul.f32 -1.442695, %v486_v2  ;;  %v489_v8 = vpop.f32.mrb[24].mxu0 }
 0x191   : > { %v1887_v6 = vpop.eup %1886  ;;  %1630 = vmatprep.mubr.f32.mxu1 %v836_v4  ;;  %1906 = vtanh.f32 %v586_v57  ;;  %v491_v11 = vpop.f32.mrb[25].mxu0  ;;  %v490_v49 = vadd.f32 %v489_v8, %v2554_v53 }
 0x192   : > { %v1889_v9 = vpop.eup %1888  ;;  %v744_v10 = vadd.f32 1.0, %v1887_v6  ;;  %1908 = vrcp.f32 %v763_v62  ;;  %v492_v15 = vadd.f32 %v491_v11, %v2550_v45 }
 0x193   : > { %v1891_v14 = vpop.eup %1890  ;;  %1910 = vpow2.f32 %v1512_v22  ;;  %v837_v16 = vmul.f32 %v1889_v9, %v1885_v5 }
 0x194   : > { %v1893_v17 = vpop.eup %1892  ;;  %1912 = vrcp.f32 %v744_v10  ;;  %v1513_v20 = vmul.f32 -1.442695, %v492_v15  ;;  %v495_v21 = vpop.f32.mrb[26].mxu0 }
 0x195   : > { %v1895_v18 = vpop.eup %1894  ;;  %1914 = vtanh.f32 %v472_v7  ;;  %1631 = vmatmul.mubr.f32.gmra.mrb[20].mxu1 %v837_v16  ;;  %v497_v13 = vpop.f32.mrb[27].mxu0  ;;  %v764_v26 = vadd.f32 1.0, %v1893_v17  ;;  %v496_v63 = vadd.f32 %v495_v21, %v2554_v53  ;;  %v606_v21 = vadd.f32 %v2589_v3, %v2550_v45 }
 0x196   : > { %v1897_v23 = vpop.eup %1896  ;;  %v745_v24 = vadd.f32 1.0, %v1895_v18  ;;  %1916 = vpow2.f32 %v1530_v36  ;;  %v498_v29 = vadd.f32 %v497_v13, %v2550_v45 }
 0x197   : > { %v1899_v27 = vpop.eup %1898  ;;  %1918 = vpow2.f32 %v1513_v20  ;;  %v838_v30 = vmul.f32 %v1897_v23, %v1891_v14  ;;  %v598_v20 = vadd.f32 %v2580_v46, %v2554_v53 }
 0x198   : > { %v1901_v25 = vpop.eup %1900  ;;  %1920 = vrcp.f32 %v745_v24  ;;  %v1514_v32 = vmul.f32 -1.442695, %v498_v29  ;;  %v501_v33 = vpop.f32.mrb[28].mxu0 }
 0x199   : > { %v1903_v31 = vpop.eup %1902  ;;  %1922 = vtanh.f32 %v478_v19  ;;  %1633 = vmatprep.mubr.f32.mxu1 %v838_v30  ;;  %v503_v39 = vpop.f32.mrb[29].mxu0  ;;  %v502_v36 = vadd.f32 %v501_v33, %v2554_v53  ;;  %v1532_v33 = vmul.f32 -1.442695, %v606_v21 }
 0x19a   : > { %v1905_v35 = vpop.eup %1904  ;;  %v746_v37 = vadd.f32 1.0, %v1903_v31  ;;  %1924 = vrcp.f32 %v764_v26  ;;  %v504_v43 = vadd.f32 %v503_v39, %v2550_v45 }
 0x19b   : > { %v1907_v42 = vpop.eup %1906  ;;  %1926 = vpow2.f32 %v1514_v32  ;;  %v839_v44 = vmul.f32 %v1905_v35, %v1899_v27 }
 0x19c   : > { %v1909_v47 = vpop.eup %1908  ;;  %1928 = vrcp.f32 %v746_v37  ;;  %v1515_v0 = vmul.f32 -1.442695, %v504_v43  ;;  %v507_v50 = vpop.f32.mrb[30].mxu0 }
 0x19d   : > { %v1911_v48 = vpop.eup %1910  ;;  %1634 = vmatmul.mubr.f32.gmra.mrb[22].mxu1 %v839_v44  ;;  %1930 = vtanh.f32 %v592_v34  ;;  %v2628_v52 = vmul.f32 %v1909_v47, %v2613_v1  ;;  %v509_v55 = vpop.f32.mrb[31].mxu0  ;;  %v508_v29 = vadd.f32 %v507_v50, %v2554_v53 }
 0x19e   : > { %v1913_v54 = vpop.eup %1912  ;;  %1932 = vtanh.f32 %v484_v38  ;;  %v747_v51 = vadd.f32 1.0, %v1911_v48  ;;  %v510_v58 = vadd.f32 %v509_v55, %v2550_v45 }
 0x19f   : > { %v1915_v57 = vpop.eup %1914  ;;  %1934 = vpow2.f32 %v1515_v0  ;;  %v840_v59 = vmul.f32 %v1913_v54, %v1901_v25 }
 0x1a0   : > { %v1917_v60 = vpop.eup %1916  ;;  %1936 = vrcp.f32 %v747_v51  ;;  %v1516_v2 = vmul.f32 -1.442695, %v510_v58  ;;  %v513_v4 = vpop.f32.mrb[32].mxu0 }
 0x1a1   : > { %v1919_v62 = vpop.eup %1918  ;;  %1938 = vtanh.f32 %v490_v49  ;;  %1636 = vmatprep.mubr.f32.mxu1 %v840_v59  ;;  %v515_v6 = vpop.f32.mrb[33].mxu0  ;;  %v765_v7 = vadd.f32 1.0, %v1917_v60  ;;  %v514_v39 = vadd.f32 %v513_v4, %v2554_v53 }
 0x1a2   : > { %v1921_v1 = vpop.eup %1920  ;;  %v748_v5 = vadd.f32 1.0, %v1919_v62  ;;  %1940 = vpow2.f32 %v1531_v56  ;;  %v516_v8 = vadd.f32 %v515_v6, %v2550_v45 }
 0x1a3   : > { %v1923_v22 = vpop.eup %1922  ;;  %1942 = vpow2.f32 %v1516_v2  ;;  %v841_v9 = vmul.f32 %v1921_v1, %v1915_v57 }
 0x1a4   : > { %v1925_v10 = vpop.eup %1924  ;;  %1944 = vrcp.f32 %v748_v5  ;;  %v1517_v14 = vmul.f32 -1.442695, %v516_v8  ;;  %v519_v15 = vpop.f32.mrb[34].mxu0 }
 0x1a5   : > { %v1927_v11 = vpop.eup %1926  ;;  %1946 = vtanh.f32 %v496_v63  ;;  %1637 = vmatmul.mubr.f32.gmra.mrb[24].mxu1 %v841_v9  ;;  %v2634_v16 = vmul.f32 %v1925_v10, %v1907_v42  ;;  %v521_v19 = vpop.f32.mrb[35].mxu0  ;;  %v520_v60 = vadd.f32 %v519_v15, %v2554_v53 }
 0x1a6   : > { %v1929_v17 = vpop.eup %1928  ;;  %v749_v18 = vadd.f32 1.0, %v1927_v11  ;;  %1948 = vrcp.f32 %v765_v7  ;;  %v522_v24 = vadd.f32 %v521_v19, %v2550_v45 }
 0x1a7   : > { %v1931_v23 = vpop.eup %1930  ;;  %1950 = vpow2.f32 %v1517_v14  ;;  %v842_v13 = vmul.f32 %v1929_v17, %v1923_v22  ;;  %v604_v22 = vadd.f32 %v2587_v61, %v2554_v53 }
 0x1a8   : > { %v1933_v26 = vpop.eup %1932  ;;  %1952 = vrcp.f32 %v749_v18  ;;  %v1518_v30 = vmul.f32 -1.442695, %v522_v24  ;;  %v525_v25 = vpop.f32.mrb[36].mxu0 }
 0x1a9   : > { %v1935_v27 = vpop.eup %1934  ;;  %1954 = vtanh.f32 %v502_v36  ;;  %1639 = vmatprep.mubr.f32.mxu1 %v842_v13  ;;  %v527_v46 = vpop.f32.mrb[37].mxu0  ;;  %v526_v10 = vadd.f32 %v525_v25, %v2554_v53 }
 0x1aa   : > { %v1937_v31 = vpop.eup %1936  ;;  %v750_v32 = vadd.f32 1.0, %v1935_v27  ;;  %1956 = vtanh.f32 %v598_v20  ;;  %v528_v34 = vadd.f32 %v527_v46, %v2550_v45 }
 0x1ab   : > { %v1939_v3 = vpop.eup %1938  ;;  %1958 = vpow2.f32 %v1518_v30  ;;  %v843_v35 = vmul.f32 %v1937_v31, %v1933_v26 }
 0x1ac   : > { %v1941_v37 = vpop.eup %1940  ;;  %1960 = vrcp.f32 %v750_v32  ;;  %v1519_v40 = vmul.f32 -1.442695, %v528_v34  ;;  %v531_v42 = vpop.f32.mrb[38].mxu0 }
 0x1ad   : > { %v1943_v38 = vpop.eup %1942  ;;  %1962 = vtanh.f32 %v508_v29  ;;  %1640 = vmatmul.mubr.f32.gmra.mrb[26].mxu1 %v843_v35  ;;  %v533_v47 = vpop.f32.mrb[39].mxu0  ;;  %v766_v48 = vadd.f32 1.0, %v1941_v37  ;;  %v532_v19 = vadd.f32 %v531_v42, %v2554_v53 }
 0x1ae   : > { %v1945_v43 = vpop.eup %1944  ;;  %v751_v44 = vadd.f32 1.0, %v1943_v38  ;;  %1964 = vpow2.f32 %v1532_v33  ;;  %v534_v0 = vadd.f32 %v533_v47, %v2550_v45 }
 0x1af   : > { %v1947_v49 = vpop.eup %1946  ;;  %1966 = vpow2.f32 %v1519_v40  ;;  %v844_v50 = vmul.f32 %v1945_v43, %v1939_v3 }
 0x1b0   : > { %v1949_v54 = vpop.eup %1948  ;;  %1968 = vrcp.f32 %v751_v44  ;;  %v1520_v55 = vmul.f32 -1.442695, %v534_v0  ;;  %v537_v56 = vpop.f32.mrb[40].mxu0 }
 0x1b1   : > { %v1951_v51 = vpop.eup %1950  ;;  %1970 = vtanh.f32 %v514_v39  ;;  %1642 = vmatprep.mubr.f32.mxu1 %v844_v50  ;;  %v2645_v57 = vmul.f32 %v1949_v54, %v1931_v23  ;;  %v539_v62 = vpop.f32.mrb[41].mxu0  ;;  %v538_v34 = vadd.f32 %v537_v56, %v2554_v53 }
 0x1b2   : > { %v1953_v58 = vpop.eup %1952  ;;  %v752_v59 = vadd.f32 1.0, %v1951_v51  ;;  %1972 = vrcp.f32 %v766_v48  ;;  %v540_v2 = vadd.f32 %v539_v62, %v2550_v45 }
 0x1b3   : > { %v1955_v63 = vpop.eup %1954  ;;  %1974 = vpow2.f32 %v1520_v55  ;;  %v845_v4 = vmul.f32 %v1953_v58, %v1947_v49 }
 0x1b4   : > { %v1957_v1 = vpop.eup %1956  ;;  %1976 = vrcp.f32 %v752_v59  ;;  %v1521_v6 = vmul.f32 -1.442695, %v540_v2  ;;  %v543_v7 = vpop.f32.mrb[42].mxu0 }
 0x1b5   : > { %v1959_v5 = vpop.eup %1958  ;;  %1643 = vmatmul.mubr.f32.gmra.mrb[28].mxu1 %v845_v4  ;;  %1978 = vtanh.f32 %v520_v60  ;;  %v545_v11 = vpop.f32.mrb[43].mxu0  ;;  %v544_v48 = vadd.f32 %v543_v7, %v2554_v53 }
 0x1b6   : > { %v1961_v8 = vpop.eup %1960  ;;  %v753_v9 = vadd.f32 1.0, %v1959_v5  ;;  %1980 = vpow2.f32 %v1521_v6  ;;  %v546_v14 = vadd.f32 %v545_v11, %v2550_v45 }
 0x1b7   : > { %v1963_v36 = vpop.eup %1962  ;;  %v846_v15 = vmul.f32 %v1961_v8, %v1955_v63 }
 0x1b8   : > { %v1965_v17 = vpop.eup %1964  ;;  %1982 = vrcp.f32 %v753_v9  ;;  %v1522_v20 = vmul.f32 -1.442695, %v546_v14  ;;  %v549_v21 = vpop.f32.mrb[44].mxu0 }
 0x1b9   : > { %v1967_v18 = vpop.eup %1966  ;;  %1645 = vmatprep.mubr.f32.mxu1 %v846_v15  ;;  %1984 = vtanh.f32 %v604_v22  ;;  %v551_v24 = vpop.f32.mrb[45].mxu0  ;;  %v767_v13 = vadd.f32 1.0, %v1965_v17  ;;  %v550_v55 = vadd.f32 %v549_v21, %v2554_v53 }
 0x1ba   : > { %v1969_v61 = vpop.eup %1968  ;;  %1986 = vtanh.f32 %v526_v10  ;;  %v754_v23 = vadd.f32 1.0, %v1967_v18  ;;  %v552_v27 = vadd.f32 %v551_v24, %v2550_v45  ;;  %v2672_v18 = vld [vmem:[%s2977_s4] ss:$0 sm:$0xff] }
 0x1bb   : > { %v1971_v26 = vpop.eup %1970  ;;  %1988 = vpow2.f32 %v1522_v20  ;;  %v847_v29 = vmul.f32 %v1969_v61, %v1963_v36 }
 0x1bc   : > { %v1973_v30 = vpop.eup %1972  ;;  %1990 = vrcp.f32 %v754_v23  ;;  %v1523_v31 = vmul.f32 -1.442695, %v552_v27  ;;  %v555_v32 = vpop.f32.mrb[46].mxu0 }
 0x1bd   : > { %v1975_v25 = vpop.eup %1974  ;;  %1992 = vtanh.f32 %v532_v19  ;;  %1646 = vmatmul.mubr.f32.gmra.mrb[30].mxu1 %v847_v29  ;;  %v2655_v46 = vmul.f32 %v1973_v30, %v1957_v1  ;;  %v557_v35 = vpop.f32.mrb[47].mxu0  ;;  %v556_v2 = vadd.f32 %v555_v32, %v2554_v53 }
 0x1be   : > { %v1977_v33 = vpop.eup %1976  ;;  %v755_v3 = vadd.f32 1.0, %v1975_v25  ;;  %1994 = vrcp.f32 %v767_v13  ;;  %v558_v37 = vadd.f32 %v557_v35, %v2550_v45 }
 0x1bf   : > { %1996 = vpow2.f32 %v1523_v31  ;;  %v848_v38 = vmul.f32 %v1977_v33, %v1971_v26  ;;  %v1979_v39 = vpop.eup %1978 }
 0x1c0   : > { %1998 = vrcp.f32 %v755_v3  ;;  %v1981_v40 = vpop.eup %1980  ;;  %v1524_v42 = vmul.f32 -1.442695, %v558_v37 }
 0x1c1   : > { %1648 = vmatprep.mubr.f32.mxu1 %v848_v38  ;;  %2000 = vtanh.f32 %v538_v34  ;;  %v756_v44 = vadd.f32 1.0, %v1981_v40 }
 0x1c2   : > { %v1983_v43 = vpop.eup %1982  ;;  %2002 = vpow2.f32 %v1524_v42 }
 0x1c3   : > { %v1985_v47 = vpop.eup %1984  ;;  %v849_v49 = vmul.f32 %v1983_v43, %v1979_v39  ;;  %2004 = vrcp.f32 %v756_v44 }
 0x1c4   : > { %v1987_v0 = vpop.eup %1986  ;;  %2006 = vtanh.f32 %v544_v48 }
 0x1c5   : > { %v1989_v50 = vpop.eup %1988  ;;  %1649 = vmatmul.mubr.f32.gmra.mrb[32].mxu1 %v849_v49 }
 0x1c6   : > { %v1991_v54 = vpop.eup %1990  ;;  %v757_v45 = vadd.f32 1.0, %v1989_v50 }
 0x1c7   : > { %v1993_v51 = vpop.eup %1992  ;;  %v850_v56 = vmul.f32 %v1991_v54, %v1987_v0 }
 0x1c8   : > { %v1995_v58 = vpop.eup %1994  ;;  %2008 = vrcp.f32 %v757_v45 }
 0x1c9   : > { %v1997_v59 = vpop.eup %1996  ;;  %1651 = vmatprep.mubr.f32.mxu1 %v850_v56  ;;  %v863_v60 = vmul.f32 %v1995_v58, %v1985_v47  ;;  %2010 = vtanh.f32 %v550_v55 }
 0x1ca   : > { %v1999_v62 = vpop.eup %1998  ;;  %v758_v63 = vadd.f32 1.0, %v1997_v59 }
 0x1cb   : > { %v851_v4 = vmul.f32 %v1999_v62, %v1993_v51  ;;  %v2001_v1 = vpop.eup %2000 }
 0x1cc   : > { %2012 = vrcp.f32 %v758_v63  ;;  %v2003_v5 = vpop.eup %2002 }
 0x1cd   : > { %1652 = vmatmul.mubr.f32.gmra.mrb[34].mxu1 %v851_v4  ;;  %v2005_v6 = vpop.eup %2004  ;;  %v759_v7 = vadd.f32 1.0, %v2003_v5  ;;  %2014 = vtanh.f32 %v556_v2 }
 0x1ce   : > { %v852_v22 = vmul.f32 %v2005_v6, %v2001_v1  ;;  %v2007_v8 = vpop.eup %2006 }
 0x1cf   : > { %2016 = vrcp.f32 %v759_v7 }
 0x1d0   : > { %1654 = vmatprep.mubr.f32.mxu1 %v852_v22 }
 0x1d2   : > { %v2009_v9 = vpop.eup %2008 }
 0x1d3   : > { %v853_v10 = vmul.f32 %v2009_v9, %v2007_v8  ;;  %v2011_v11 = vpop.eup %2010 }
 0x1d5   : > { %1655 = vmatmul.mubr.f32.gmra.mrb[36].mxu1 %v853_v10 }
 0x1d6   : > { %v2013_v36 = vpop.eup %2012 }
 0x1d7   : > { %v854_v14 = vmul.f32 %v2013_v36, %v2011_v11  ;;  %v2015_v15 = vpop.eup %2014 }
 0x1d9   : > { %1657 = vmatprep.mubr.f32.mxu1 %v854_v14  ;;  %v2017_v53 = vpop.eup %2016 }
 0x1da   : > { %v855_v17 = vmul.f32 %v2017_v53, %v2015_v15 }
 0x1dc   : > { %1658 = vmatmul.mubr.f32.gmra.mrb[38].mxu1 %v855_v17 }
 0x1dd   : > { %1660 = vmatprep.mubr.f32.mxu1 %v2594_v12 }
 0x1e0   : > { %1661 = vmatmul.mubr.f32.gmra.mrb[40].mxu1 %v2601_v28 }
 0x1e1   : > { %1663 = vmatprep.mubr.f32.mxu1 %v2605_v41 }
 0x1e4   : > { %1664 = vmatmul.mubr.f32.gmra.mrb[42].mxu1 %v2628_v52 }
 0x1e5   : > { %1666 = vmatprep.mubr.f32.mxu1 %v2634_v16 }
 0x1e8   : > { %1667 = vmatmul.mubr.f32.gmra.mrb[44].mxu1 %v2645_v57 }
 0x1e9   : > { %1669 = vmatprep.mubr.f32.mxu1 %v2655_v46 }
 0x1ec   : > { %1670 = vmatmul.mubr.f32.gmra.mrb[46].mxu1 %v863_v60 }
 0x258   : > { %v1626_v19 = vpop.f32.mrb[16].mxu1 }
 0x259   : > { %v959_v12 = vadd.f32 %v1626_v19, %v2672_v18  ;;  %v953_v28 = vpop.f32.mrb[17].mxu1 }
 0x25a   : > { %v954_v41 = vadd.f32 %v2672_v18, %v953_v28 }
 0x25c   : > { %v1112_v20 = vmax.f32 %v954_v41, %v959_v12 }
 0x260   : > { %v1629_v52 = vpop.f32.mrb[18].mxu1 }
 0x261   : > { %v963_v21 = vpop.f32.mrb[19].mxu1  ;;  %v969_v57 = vadd.f32 %v1629_v52, %v2672_v18 }
 0x262   : > { %v964_v16 = vadd.f32 %v2672_v18, %v963_v21 }
 0x264   : > { %v1113_v61 = vmax.f32 %v1112_v20, %v964_v16 }
 0x266   : > { %v1114_v23 = vmax.f32 %v1113_v61, %v969_v57 }
 0x268   : > { %v1632_v24 = vpop.f32.mrb[20].mxu1 }
 0x269   : > { %v973_v13 = vpop.f32.mrb[21].mxu1  ;;  %v979_v27 = vadd.f32 %v1632_v24, %v2672_v18 }
 0x26a   : > { %v974_v26 = vadd.f32 %v2672_v18, %v973_v13 }
 0x26c   : > { %v1115_v29 = vmax.f32 %v1114_v23, %v974_v26 }
 0x26e   : > { %v1116_v30 = vmax.f32 %v1115_v29, %v979_v27 }
 0x270   : > { %v1635_v25 = vpop.f32.mrb[22].mxu1 }
 0x271   : > { %v983_v31 = vpop.f32.mrb[23].mxu1  ;;  %v989_v46 = vadd.f32 %v1635_v25, %v2672_v18 }
 0x272   : > { %v984_v32 = vadd.f32 %v2672_v18, %v983_v31 }
 0x274   : > { %v1117_v33 = vmax.f32 %v1116_v30, %v984_v32 }
 0x276   : > { %v1118_v3 = vmax.f32 %v1117_v33, %v989_v46 }
 0x278   : > { %v1119_v34 = vrot.slane %v1118_v3, 4  ;;  %v1638_v35 = vpop.f32.mrb[24].mxu1 }
 0x279   : > { %v2683_v37 = vadd.f32 %v1638_v35, %v2672_v18  ;;  %v993_v38 = vpop.f32.mrb[25].mxu1 }
 0x27a   : > { %v1120_v39 = vmax.f32 %v1118_v3, %v1119_v34  ;;  %v2686_v40 = vadd.f32 %v2672_v18, %v993_v38 }
 0x27c   : > { %v1121_v42 = vrot.slane %v1120_v39, 2  ;;  %v1125_v43 = vmax.f32 %v2686_v40, %v2683_v37 }
 0x27e   : > { %v1122_v44 = vmax.f32 %v1120_v39, %v1121_v42 }
 0x280   : > { %v1123_v47 = vrot.slane %v1122_v44, 1  ;;  %v1641_v48 = vpop.f32.mrb[26].mxu1 }
 0x281   : > { %v1003_v49 = vpop.f32.mrb[27].mxu1  ;;  %v2694_v2 = vadd.f32 %v1641_v48, %v2672_v18 }
 0x282   : > { %v1124_v0 = vmax.f32 %v1122_v44, %v1123_v47  ;;  %v2691_v50 = vadd.f32 %v2672_v18, %v1003_v49 }
 0x284   : > { %v1164_v54 = vsub.f32 %v954_v41, %v1124_v0  ;;  %v1165_v45 = vsub.f32 %v959_v12, %v1124_v0  ;;  %v1166_v51 = vsub.f32 %v964_v16, %v1124_v0  ;;  %v1167_v55 = vsub.f32 %v969_v57, %v1124_v0 }
 0x285   : > { %v1168_v56 = vsub.f32 %v974_v26, %v1124_v0  ;;  %v1169_v58 = vsub.f32 %v979_v27, %v1124_v0  ;;  %v1170_v59 = vsub.f32 %v984_v32, %v1124_v0  ;;  %v1171_v60 = vsub.f32 %v989_v46, %v1124_v0 }
 0x286   : > { %v1196_v62 = vmul.f32 1.442695, %v1164_v54  ;;  %v1198_v63 = vmul.f32 1.442695, %v1165_v45  ;;  %v1126_v4 = vmax.f32 %v1125_v43, %v2691_v50  ;;  %v1200_v1 = vmul.f32 1.442695, %v1166_v51 }
 0x287   : > { %v1202_v7 = vmul.f32 1.442695, %v1167_v55  ;;  %v1204_v9 = vmul.f32 1.442695, %v1168_v56  ;;  %v1206_v36 = vmul.f32 1.442695, %v1169_v58 }
 0x288   : > { %2018 = vpow2.f32 %v1196_v62  ;;  %v1644_v5 = vpop.f32.mrb[28].mxu1  ;;  %v1127_v6 = vmax.f32 %v1126_v4, %v2694_v2  ;;  %v1208_v15 = vmul.f32 1.442695, %v1170_v59  ;;  %v1210_v17 = vmul.f32 1.442695, %v1171_v60 }
 0x289   : > { %2020 = vpow2.f32 %v1198_v63  ;;  %v1013_v22 = vpop.f32.mrb[29].mxu1  ;;  %v2702_v10 = vadd.f32 %v1644_v5, %v2672_v18 }
 0x28a   : > { %v2699_v8 = vadd.f32 %v2672_v18, %v1013_v22  ;;  %2022 = vpow2.f32 %v1200_v1 }
 0x28b   : > { %2024 = vpow2.f32 %v1202_v7 }
 0x28c   : > { %v1128_v11 = vmax.f32 %v1127_v6, %v2699_v8  ;;  %2026 = vpow2.f32 %v1204_v9 }
 0x28d   : > { %2028 = vpow2.f32 %v1206_v36 }
 0x28e   : > { %v1129_v14 = vmax.f32 %v1128_v11, %v2702_v10  ;;  %2030 = vpow2.f32 %v1208_v15 }
 0x28f   : > { %2032 = vpow2.f32 %v1210_v17 }
 0x290   : > { %v1647_v53 = vpop.f32.mrb[30].mxu1 }
 0x291   : > { %v1023_v19 = vpop.f32.mrb[31].mxu1  ;;  %v2716_v52 = vadd.f32 %v1647_v53, %v2672_v18 }
 0x292   : > { %v2706_v12 = vpop.eup %2018  ;;  %v2709_v28 = vadd.f32 %v2672_v18, %v1023_v19 }
 0x293   : > { %v2711_v41 = vpop.eup %2020 }
 0x294   : > { %v1260_v20 = vadd.f32 %v2711_v41, %v2706_v12  ;;  %v1130_v21 = vmax.f32 %v1129_v14, %v2709_v28  ;;  %v2719_v16 = vpop.eup %2022 }
 0x295   : > { %v2723_v23 = vpop.eup %2024 }
 0x296   : > { %v1261_v57 = vadd.f32 %v2719_v16, %v1260_v20  ;;  %v1131_v61 = vmax.f32 %v1130_v21, %v2716_v52  ;;  %v2726_v27 = vpop.eup %2026 }
 0x297   : > { %v2735_v46 = vpop.eup %2028 }
 0x298   : > { %v1262_v24 = vadd.f32 %v2723_v23, %v1261_v57  ;;  %v1132_v13 = vrot.slane %v1131_v61, 4  ;;  %v1650_v26 = vpop.f32.mrb[32].mxu1  ;;  %v2740_v35 = vpop.eup %2030 }
 0x299   : > { %v2729_v29 = vadd.f32 %v1650_v26, %v2672_v18  ;;  %v1033_v30 = vpop.f32.mrb[33].mxu1  ;;  %v2743_v42 = vpop.eup %2032 }
 0x29a   : > { %v1263_v25 = vadd.f32 %v2726_v27, %v1262_v24  ;;  %v1133_v31 = vmax.f32 %v1131_v61, %v1132_v13  ;;  %v2733_v32 = vadd.f32 %v2672_v18, %v1033_v30 }
 0x29c   : > { %v1264_v33 = vadd.f32 %v2735_v46, %v1263_v25  ;;  %v1134_v3 = vrot.slane %v1133_v31, 2  ;;  %v1138_v34 = vmax.f32 %v2733_v32, %v2729_v29 }
 0x29e   : > { %v1265_v38 = vadd.f32 %v2740_v35, %v1264_v33  ;;  %v1135_v39 = vmax.f32 %v1133_v31, %v1134_v3 }
 0x2a0   : > { %v1266_v43 = vadd.f32 %v2743_v42, %v1265_v38  ;;  %v1136_v44 = vrot.slane %v1135_v39, 1  ;;  %v1653_v47 = vpop.f32.mrb[34].mxu1 }
 0x2a1   : > { %v1043_v48 = vpop.f32.mrb[35].mxu1 }
 0x2a2   : > { %v1267_v49 = vrot.slane %v1266_v43, 4  ;;  %v1137_v0 = vmax.f32 %v1135_v39, %v1136_v44  ;;  %v2747_v54 = vadd.f32 %v2672_v18, %v1043_v48 }
 0x2a4   : > { %v1268_v45 = vadd.f32 %v1267_v49, %v1266_v43  ;;  %v1172_v51 = vsub.f32 %v2686_v40, %v1137_v0  ;;  %v1173_v55 = vsub.f32 %v2683_v37, %v1137_v0  ;;  %v1174_v56 = vsub.f32 %v2691_v50, %v1137_v0 }
 0x2a5   : > { %v1175_v58 = vsub.f32 %v2694_v2, %v1137_v0  ;;  %v1176_v59 = vsub.f32 %v2699_v8, %v1137_v0  ;;  %v1177_v60 = vsub.f32 %v2702_v10, %v1137_v0  ;;  %v1178_v62 = vsub.f32 %v2709_v28, %v1137_v0 }
 0x2a6   : > { %v1269_v63 = vrot.slane %v1268_v45, 2  ;;  %v1179_v4 = vsub.f32 %v2716_v52, %v1137_v0  ;;  %v1212_v1 = vmul.f32 1.442695, %v1172_v51  ;;  %v1214_v5 = vmul.f32 1.442695, %v1173_v55 }
 0x2a7   : > { %v1216_v6 = vmul.f32 1.442695, %v1174_v56  ;;  %v2758_v40 = vadd.f32 %v1653_v47, %v2672_v18  ;;  %v1139_v37 = vmax.f32 %v1138_v34, %v2747_v54  ;;  %v1218_v7 = vmul.f32 1.442695, %v1175_v58 }
 0x2a8   : > { %v1270_v50 = vadd.f32 %v1269_v63, %v1268_v45  ;;  %2034 = vpow2.f32 %v1212_v1  ;;  %v1656_v2 = vpop.f32.mrb[36].mxu1  ;;  %v1220_v36 = vmul.f32 1.442695, %v1176_v59  ;;  %v1222_v53 = vmul.f32 1.442695, %v1177_v60 }
 0x2a9   : > { %2036 = vpow2.f32 %v1214_v5  ;;  %v1053_v22 = vpop.f32.mrb[37].mxu1  ;;  %v1140_v8 = vmax.f32 %v1139_v37, %v2758_v40  ;;  %v2766_v14 = vadd.f32 %v1656_v2, %v2672_v18  ;;  %v1224_v19 = vmul.f32 1.442695, %v1178_v62 }
 0x2aa   : > { %v1271_v9 = vrot.slane %v1270_v50, 1  ;;  %v2763_v10 = vadd.f32 %v2672_v18, %v1053_v22  ;;  %2038 = vpow2.f32 %v1216_v6  ;;  %v1226_v21 = vmul.f32 1.442695, %v1179_v4 }
 0x2ab   : > { %2040 = vpow2.f32 %v1218_v7 }
 0x2ac   : > { %v1272_v11 = vadd.f32 %v1271_v9, %v1270_v50  ;;  %v1141_v15 = vmax.f32 %v1140_v8, %v2763_v10 }
 0x2ae   : > { %2042 = vrcp.f32 %v1272_v11  ;;  %v1142_v17 = vmax.f32 %v1141_v15, %v2766_v14 }
 0x2af   : > { %2044 = vpow2.f32 %v1220_v36  ;;  %v1659_v28 = vpop.f32.mrb[38].mxu1 }
 0x2b0   : > { %v1063_v20 = vpop.f32.mrb[39].mxu1  ;;  %2046 = vpow2.f32 %v1222_v53  ;;  %v2780_v13 = vadd.f32 %v1659_v28, %v2672_v18 }
 0x2b1   : > { %v2773_v57 = vadd.f32 %v2672_v18, %v1063_v20  ;;  %2048 = vpow2.f32 %v1224_v19 }
 0x2b2   : > { %v2770_v52 = vpop.eup %2034  ;;  %2050 = vpow2.f32 %v1226_v21 }
 0x2b3   : > { %v2775_v61 = vpop.eup %2036  ;;  %v1143_v26 = vmax.f32 %v1142_v17, %v2773_v57  ;;  %v1662_v30 = vpop.f32.mrb[40].mxu1 }
 0x2b4   : > { %v1273_v24 = vadd.f32 %v2775_v61, %v2770_v52  ;;  %v2783_v25 = vpop.eup %2038  ;;  %v2786_v31 = vadd.f32 %v1662_v30, %v2672_v18  ;;  %v1073_v33 = vpop.f32.mrb[41].mxu1 }
 0x2b5   : > { %v1144_v34 = vmax.f32 %v1143_v26, %v2780_v13  ;;  %v2791_v38 = vadd.f32 %v2672_v18, %v1073_v33  ;;  %v2793_v39 = vpop.eup %2040 }
 0x2b6   : > { %v1274_v3 = vadd.f32 %v2783_v25, %v1273_v24 }
 0x2b7   : > { %v1145_v47 = vrot.slane %v1144_v34, 4  ;;  %v1151_v48 = vmax.f32 %v2791_v38, %v2786_v31  ;;  %v1665_v49 = vpop.f32.mrb[42].mxu1 }
 0x2b8   : > { %v2043_v43 = vpop.eup %2042  ;;  %v1275_v44 = vadd.f32 %v2793_v39, %v1274_v3  ;;  %v1083_v56 = vpop.f32.mrb[43].mxu1 }
 0x2b9   : > { %v1316_v0 = vmul.f32 %v2043_v43, %v2706_v12  ;;  %v1317_v45 = vmul.f32 %v2043_v43, %v2711_v41  ;;  %v1318_v51 = vmul.f32 %v2043_v43, %v2719_v16  ;;  %v1319_v55 = vmul.f32 %v2043_v43, %v2723_v23  ;;  %v2802_v58 = vpop.eup %2044 }
 0x2ba   : > { %v1320_v59 = vmul.f32 %v2043_v43, %v2726_v27  ;;  %v1321_v60 = vmul.f32 %v2043_v43, %v2735_v46  ;;  %v1322_v62 = vmul.f32 %v2043_v43, %v2740_v35  ;;  %v1323_v63 = vmul.f32 %v2043_v43, %v2743_v42  ;;  %v2820_v23 = vpop.eup %2046 }
 0x2bb   : > { %1348 = vst [vmem:[%s2810_s10] sm:$0xff] %v1316_v0  ;;  %1349 = vst [vmem:[%s2810_s10 + $0x8] sm:$0xff] %v1317_v45  ;;  %v1276_v12 = vadd.f32 %v2802_v58, %v1275_v44  ;;  %v1146_v41 = vmax.f32 %v1144_v34, %v1145_v47  ;;  %v2818_v16 = vadd.f32 %v2672_v18, %v1083_v56  ;;  %v1668_v27 = vpop.f32.mrb[44].mxu1  ;;  %v2831_v5 = vpop.eup %2048 }
 0x2bc   : > { %1350 = vst [vmem:[%s2810_s10 + $0x10] sm:$0xff] %v1318_v51  ;;  %1351 = vst [vmem:[%s2810_s10 + $0x18] sm:$0xff] %v1319_v55  ;;  %v2828_v42 = vadd.f32 %v1665_v49, %v2672_v18  ;;  %v1093_v1 = vpop.f32.mrb[45].mxu1  ;;  %v2838_v7 = vpop.eup %2050  ;;  %v2842_v11 = vadd.f32 %v1668_v27, %v2672_v18 }
 0x2bd   : > { %1352 = vst [vmem:[%s2810_s10 + $0x20] sm:$0xff] %v1320_v59  ;;  %1353 = vst [vmem:[%s2810_s10 + $0x28] sm:$0xff] %v1321_v60  ;;  %v1277_v46 = vadd.f32 %v2820_v23, %v1276_v12  ;;  %v1147_v35 = vrot.slane %v1146_v41, 2  ;;  %v1152_v4 = vmax.f32 %v1151_v48, %v2818_v16  ;;  %v2834_v6 = vadd.f32 %v2672_v18, %v1093_v1 }
 0x2be   : > { %1354 = vst [vmem:[%s2810_s10 + $0x30] sm:$0xff] %v1322_v62  ;;  %1355 = vst [vmem:[%s2810_s10 + $0x38] sm:$0xff] %v1323_v63 }
 0x2bf   : > { %v1278_v37 = vadd.f32 %v2831_v5, %v1277_v46  ;;  %v1148_v50 = vmax.f32 %v1146_v41, %v1147_v35  ;;  %v1153_v2 = vmax.f32 %v1152_v4, %v2828_v42  ;;  %v1671_v22 = vpop.f32.mrb[46].mxu1 }
 0x2c0   : > { %v1103_v15 = vpop.f32.mrb[47].mxu1 }
 0x2c1   : > { %v1279_v8 = vadd.f32 %v2838_v7, %v1278_v37  ;;  %v1149_v9 = vrot.slane %v1148_v50, 1  ;;  %v1154_v36 = vmax.f32 %v1153_v2, %v2834_v6  ;;  %v2847_v28 = vadd.f32 %v2672_v18, %v1103_v15 }
 0x2c3   : > { %v1280_v53 = vrot.slane %v1279_v8, 4  ;;  %v1150_v17 = vmax.f32 %v1148_v50, %v1149_v9  ;;  %v1155_v19 = vmax.f32 %v1154_v36, %v2842_v11 }
 0x2c5   : > { %v1281_v20 = vadd.f32 %v1280_v53, %v1279_v8  ;;  %v1180_v21 = vsub.f32 %v2733_v32, %v1150_v17  ;;  %v1181_v24 = vsub.f32 %v2729_v29, %v1150_v17  ;;  %v1182_v26 = vsub.f32 %v2747_v54, %v1150_v17 }
 0x2c6   : > { %v1183_v30 = vsub.f32 %v2758_v40, %v1150_v17  ;;  %v1184_v33 = vsub.f32 %v2763_v10, %v1150_v17  ;;  %v1185_v3 = vsub.f32 %v2766_v14, %v1150_v17  ;;  %v1186_v34 = vsub.f32 %v2773_v57, %v1150_v17 }
 0x2c7   : > { %v1282_v43 = vrot.slane %v1281_v20, 2  ;;  %v1187_v44 = vsub.f32 %v2780_v13, %v1150_v17  ;;  %v1228_v47 = vmul.f32 1.442695, %v1180_v21  ;;  %v1230_v48 = vmul.f32 1.442695, %v1181_v24 }
 0x2c8   : > { %v1232_v49 = vmul.f32 1.442695, %v1182_v26  ;;  %v2858_v32 = vadd.f32 %v1671_v22, %v2672_v18  ;;  %v1156_v29 = vmax.f32 %v1155_v19, %v2847_v28  ;;  %v1234_v40 = vmul.f32 1.442695, %v1183_v30 }
 0x2c9   : > { %v1283_v54 = vadd.f32 %v1282_v43, %v1281_v20  ;;  %2052 = vpow2.f32 %v1228_v47  ;;  %v1236_v45 = vmul.f32 1.442695, %v1184_v33  ;;  %v1238_v51 = vmul.f32 1.442695, %v1185_v3 }
 0x2ca   : > { %2054 = vpow2.f32 %v1230_v48  ;;  %v1157_v10 = vmax.f32 %v1156_v29, %v2858_v32  ;;  %v1240_v18 = vmul.f32 1.442695, %v1186_v34  ;;  %v1242_v60 = vmul.f32 1.442695, %v1187_v44 }
 0x2cb   : > { %v1284_v14 = vrot.slane %v1283_v54, 1  ;;  %2056 = vpow2.f32 %v1232_v49 }
 0x2cc   : > { %v1158_v57 = vrot.slane %v1157_v10, 4  ;;  %2058 = vpow2.f32 %v1234_v40 }
 0x2cd   : > { %v1285_v0 = vadd.f32 %v1284_v14, %v1283_v54 }
 0x2ce   : > { %v1159_v13 = vmax.f32 %v1157_v10, %v1158_v57 }
 0x2cf   : > { %2060 = vrcp.f32 %v1285_v0 }
 0x2d0   : > { %v1160_v55 = vrot.slane %v1159_v13, 2  ;;  %2062 = vpow2.f32 %v1236_v45 }
 0x2d1   : > { %2064 = vpow2.f32 %v1238_v51 }
 0x2d2   : > { %v1161_v56 = vmax.f32 %v1159_v13, %v1160_v55  ;;  %2066 = vpow2.f32 %v1240_v18 }
 0x2d3   : > { %v2862_v59 = vpop.eup %2052  ;;  %2068 = vpow2.f32 %v1242_v60 }
 0x2d4   : > { %v2864_v62 = vpop.eup %2054  ;;  %v1162_v63 = vrot.slane %v1161_v56, 1 }
 0x2d5   : > { %v1286_v12 = vadd.f32 %v2864_v62, %v2862_v59  ;;  %v2868_v41 = vpop.eup %2056 }
 0x2d6   : > { %v1163_v27 = vmax.f32 %v1161_v56, %v1162_v63  ;;  %v2871_v35 = vpop.eup %2058 }
 0x2d7   : > { %v1287_v46 = vadd.f32 %v2868_v41, %v1286_v12 }
 0x2d8   : > { %v1188_v4 = vsub.f32 %v2791_v38, %v1163_v27  ;;  %v1189_v1 = vsub.f32 %v2786_v31, %v1163_v27  ;;  %v1190_v37 = vsub.f32 %v2818_v16, %v1163_v27  ;;  %v1191_v50 = vsub.f32 %v2828_v42, %v1163_v27 }
 0x2d9   : > { %v2061_v2 = vpop.eup %2060  ;;  %v1288_v22 = vadd.f32 %v2871_v35, %v1287_v46  ;;  %v1192_v8 = vsub.f32 %v2834_v6, %v1163_v27  ;;  %v1193_v9 = vsub.f32 %v2842_v11, %v1163_v27  ;;  %v1194_v36 = vsub.f32 %v2847_v28, %v1163_v27 }
 0x2da   : > { %v1324_v38 = vmul.f32 %v2061_v2, %v2770_v52  ;;  %v1325_v31 = vmul.f32 %v2061_v2, %v2775_v61  ;;  %v1326_v16 = vmul.f32 %v2061_v2, %v2783_v25  ;;  %v1327_v42 = vmul.f32 %v2061_v2, %v2793_v39  ;;  %v2885_v15 = vpop.eup %2062 }
 0x2db   : > { %v1328_v53 = vmul.f32 %v2061_v2, %v2802_v58  ;;  %v1329_v6 = vmul.f32 %v2061_v2, %v2820_v23  ;;  %v1330_v11 = vmul.f32 %v2061_v2, %v2831_v5  ;;  %v1331_v52 = vmul.f32 %v2061_v2, %v2838_v7  ;;  %v2065_v19 = vpop.eup %2064 }
 0x2dc   : > { %1356 = vst [vmem:[%s2810_s10 + $0x40] sm:$0xff] %v1324_v38  ;;  %1357 = vst [vmem:[%s2810_s10 + $0x48] sm:$0xff] %v1325_v31  ;;  %v1289_v61 = vadd.f32 %v2885_v15, %v1288_v22  ;;  %v1195_v25 = vsub.f32 %v2858_v32, %v1163_v27  ;;  %v1244_v39 = vmul.f32 1.442695, %v1188_v4  ;;  %v1246_v17 = vmul.f32 1.442695, %v1189_v1  ;;  %v2067_v5 = vpop.eup %2066 }
 0x2dd   : > { %1358 = vst [vmem:[%s2810_s10 + $0x50] sm:$0xff] %v1326_v16  ;;  %1359 = vst [vmem:[%s2810_s10 + $0x58] sm:$0xff] %v1327_v42  ;;  %v1248_v58 = vmul.f32 1.442695, %v1190_v37  ;;  %v1250_v7 = vmul.f32 1.442695, %v1191_v50  ;;  %v2069_v20 = vpop.eup %2068 }
 0x2de   : > { %1360 = vst [vmem:[%s2810_s10 + $0x60] sm:$0xff] %v1328_v53  ;;  %1361 = vst [vmem:[%s2810_s10 + $0x68] sm:$0xff] %v1329_v6  ;;  %v1290_v23 = vadd.f32 %v2065_v19, %v1289_v61  ;;  %2070 = vpow2.f32 %v1244_v39  ;;  %v1252_v21 = vmul.f32 1.442695, %v1192_v8  ;;  %v1254_v26 = vmul.f32 1.442695, %v1193_v9 }
 0x2df   : > { %1362 = vst [vmem:[%s2810_s10 + $0x70] sm:$0xff] %v1330_v11  ;;  %1363 = vst [vmem:[%s2810_s10 + $0x78] sm:$0xff] %v1331_v52  ;;  %2072 = vpow2.f32 %v1246_v17  ;;  %v1256_v33 = vmul.f32 1.442695, %v1194_v36  ;;  %v1258_v34 = vmul.f32 1.442695, %v1195_v25 }
 0x2e0   : > { %v1291_v28 = vadd.f32 %v2067_v5, %v1290_v23  ;;  %2074 = vpow2.f32 %v1248_v58 }
 0x2e1   : > { %2076 = vpow2.f32 %v1250_v7 }
 0x2e2   : > { %v1292_v24 = vadd.f32 %v2069_v20, %v1291_v28  ;;  %2078 = vpow2.f32 %v1252_v21 }
 0x2e3   : > { %2080 = vpow2.f32 %v1254_v26 }
 0x2e4   : > { %v1293_v30 = vrot.slane %v1292_v24, 4  ;;  %2082 = vpow2.f32 %v1256_v33 }
 0x2e5   : > { %2084 = vpow2.f32 %v1258_v34 }
 0x2e6   : > { %v1294_v3 = vadd.f32 %v1293_v30, %v1292_v24 }
 0x2e8   : > { %v2071_v43 = vpop.eup %2070  ;;  %v1295_v44 = vrot.slane %v1294_v3, 2 }
 0x2e9   : > { %v2073_v47 = vpop.eup %2072 }
 0x2ea   : > { %v1296_v48 = vadd.f32 %v1295_v44, %v1294_v3  ;;  %v1299_v49 = vadd.f32 %v2073_v47, %v2071_v43  ;;  %v2075_v32 = vpop.eup %2074 }
 0x2eb   : > { %v2077_v40 = vpop.eup %2076 }
 0x2ec   : > { %v1297_v29 = vrot.slane %v1296_v48, 1  ;;  %v1300_v54 = vadd.f32 %v2075_v32, %v1299_v49  ;;  %v2079_v57 = vpop.eup %2078 }
 0x2ed   : > { %v2081_v45 = vpop.eup %2080 }
 0x2ee   : > { %v1298_v10 = vadd.f32 %v1297_v29, %v1296_v48  ;;  %v1301_v14 = vadd.f32 %v2077_v40, %v1300_v54  ;;  %v2083_v51 = vpop.eup %2082 }
 0x2ef   : > { %v2085_v18 = vpop.eup %2084 }
 0x2f0   : > { %2086 = vrcp.f32 %v1298_v10  ;;  %v1302_v0 = vadd.f32 %v2079_v57, %v1301_v14 }
 0x2f2   : > { %v1303_v13 = vadd.f32 %v2081_v45, %v1302_v0 }
 0x2f4   : > { %v1304_v55 = vadd.f32 %v2083_v51, %v1303_v13 }
 0x2f6   : > { %v1305_v56 = vadd.f32 %v2085_v18, %v1304_v55 }
 0x2f8   : > { %v1306_v60 = vrot.slane %v1305_v56, 4 }
 0x2fa   : > { %v2087_v63 = vpop.eup %2086  ;;  %v1307_v12 = vadd.f32 %v1306_v60, %v1305_v56 }
 0x2fb   : > { %v1332_v27 = vmul.f32 %v2087_v63, %v2862_v59  ;;  %v1333_v46 = vmul.f32 %v2087_v63, %v2864_v62  ;;  %v1334_v4 = vmul.f32 %v2087_v63, %v2868_v41  ;;  %v1335_v1 = vmul.f32 %v2087_v63, %v2871_v35 }
 0x2fc   : > { %v1336_v37 = vmul.f32 %v2087_v63, %v2885_v15  ;;  %v1337_v50 = vmul.f32 %v2087_v63, %v2065_v19  ;;  %v1338_v2 = vmul.f32 %v2087_v63, %v2067_v5  ;;  %v1339_v22 = vmul.f32 %v2087_v63, %v2069_v20 }
 0x2fd   : > { %1364 = vst [vmem:[%s2810_s10 + $0x80] sm:$0xff] %v1332_v27  ;;  %1365 = vst [vmem:[%s2810_s10 + $0x88] sm:$0xff] %v1333_v46  ;;  %v1308_v8 = vrot.slane %v1307_v12, 2 }
 0x2fe   : > { %1366 = vst [vmem:[%s2810_s10 + $0x90] sm:$0xff] %v1334_v4  ;;  %1367 = vst [vmem:[%s2810_s10 + $0x98] sm:$0xff] %v1335_v1 }
 0x2ff   : > { %1368 = vst [vmem:[%s2810_s10 + $0xa0] sm:$0xff] %v1336_v37  ;;  %1369 = vst [vmem:[%s2810_s10 + $0xa8] sm:$0xff] %v1337_v50  ;;  %v1309_v59 = vadd.f32 %v1308_v8, %v1307_v12 }
 0x300   : > { %1370 = vst [vmem:[%s2810_s10 + $0xb0] sm:$0xff] %v1338_v2  ;;  %1371 = vst [vmem:[%s2810_s10 + $0xb8] sm:$0xff] %v1339_v22 }
 0x301   : > { %v1310_v62 = vrot.slane %v1309_v59, 1 }
 0x303   : > { %v1311_v41 = vadd.f32 %v1310_v62, %v1309_v59 }
 0x305   : > { %2088 = vrcp.f32 %v1311_v41 }
 0x30f   : > { %v2089_v35 = vpop.eup %2088 }
 0x310   : > { %v1340_v9 = vmul.f32 %v2089_v35, %v2071_v43  ;;  %v1341_v36 = vmul.f32 %v2089_v35, %v2073_v47  ;;  %v1342_v38 = vmul.f32 %v2089_v35, %v2075_v32  ;;  %v1343_v31 = vmul.f32 %v2089_v35, %v2077_v40 }
 0x311   : > { %v1344_v16 = vmul.f32 %v2089_v35, %v2079_v57  ;;  %v1345_v42 = vmul.f32 %v2089_v35, %v2081_v45  ;;  %v1346_v15 = vmul.f32 %v2089_v35, %v2083_v51  ;;  %v1347_v53 = vmul.f32 %v2089_v35, %v2085_v18 }
 0x312   : > { %1372 = vst [vmem:[%s2810_s10 + $0xc0] sm:$0xff] %v1340_v9  ;;  %1373 = vst [vmem:[%s2810_s10 + $0xc8] sm:$0xff] %v1341_v36 }
 0x313   : > { %1374 = vst [vmem:[%s2810_s10 + $0xd0] sm:$0xff] %v1342_v38  ;;  %1375 = vst [vmem:[%s2810_s10 + $0xd8] sm:$0xff] %v1343_v31 }
 0x314   : > { %1376 = vst [vmem:[%s2810_s10 + $0xe0] sm:$0xff] %v1344_v16  ;;  %1377 = vst [vmem:[%s2810_s10 + $0xe8] sm:$0xff] %v1345_v42 }
 0x315   : > { %1378 = vst [vmem:[%s2810_s10 + $0xf0] sm:$0xff] %v1346_v15  ;;  %1379 = vst [vmem:[%s2810_s10 + $0xf8] sm:$0xff] %v1347_v53 }
 0x316   : > { %2189 = shalt.err (!%p2186_p2)
}
 0x317   : > { %s2190_s14 = scalar_lea.hbm %s2919_s11, 4096  ;;  %s2194_s12 = scalar_lea.hbm %s2978_s5, 8192 }
 0x318   : > { %p2191_p13 = scmp.ne.s32.totalorder %s2919_s11, %s2190_s14  ;;  %p2195_p4 = scmp.lt.u32.totalorder %s2919_s11, %s2978_s5 }
 0x319   : > { %p2196_p7 = scmp.lt.u32.totalorder %s2194_s12, %s2190_s14  ;;  %p2198_p11 = scmp.lt.u32.totalorder %s2190_s14, %s2919_s11 }
 0x31a   : > { %p2192_p6 = pnand %p2191_p13, %p2992_p0 }
 0x31b   : > { %p2197_p8 = por %p2196_p7, %p2195_p4 }
 0x31c   : > { %p2193_p10 = pneg %p2192_p6 }
 0x31d   : > { %p2199_p1 = por %p2198_p11, %p2197_p8 }
 0x31f   : > { %p2200_p3 = pnand %p2199_p1, %p2193_p10 }
 0x321   : > { %2203 = shalt.err (!%p2200_p3)
}
 0x322   : > { %s2257_s28 = smov 128   ;;  %s2258_s9 = smov 8  }
 0x323   : > { %1762 = dma.vmem_to_hbm [thread:$0]  (%p2992_p0), %s2921_s15, 4096, %s2919_s11, %s1381_s22, %s2257_s28, %s2257_s28, %s2258_s9  }
 0x324 PF: > { %s1410_s30 = sand.u32 1, %s2234_s18   ;;  %p2993_p5 = scmp.ne.s32.totalorder %s2983_s25, 0 }
 0x325   : > { %p2994_p9 = scmp.ge.s32.totalorder %s2246_s21, 2  ;;  %s1411_s23 = scalar_lea.sflag [#allocation4], %s1410_s30 }
 0x327   : > { %p1776_p12 = pnand %p2994_p9, %p2993_p5 }
 0x329   : > { %2229 = dma.done.wait (!%p1776_p12), %s1411_s23, 4096  }
 0x32a   : > { %2231 = vsyncadd (!%p1776_p12), %s1411_s23, 4294963200  ;;  %p19_p2 = scmp.ge.s32.totalorder %s2402_s16, 4   ;;  %s2995_s18 = smov %s2238_s19 }
 0x32b   : > { %s2996_s19 = smov %s2242_s20  ;;  %s2997_s20 = smov %s2411_s27 }
 0x32c   : > { %s2998_s21 = smov %s2402_s16  ;;  %21 = sbr.rel (!%p19_p2) target bundleno = 6 (0x6), region = 93 }
 0x333   :  { %1416 = vsyncpa [#allocation3], 1 }
 0x334   :  { %1418 = vsyncpa [#allocation3 + $0x1], 1 }
 0x335   :  { %1419 = vsyncpa [#allocation6], 1 }
 0x336   :  { %1420 = vsyncpa [#allocation4], 1 }
 0x337   :  { %1422 = vsyncpa [#allocation4 + $0x1], 1 }

</bundles_post_ra>
